<compile_context>
chip_gen: v7x
topology: tpu7x:2x2x1
jax: 0.10.0
libtpu: 0.0.40
codegen_flags: <defaults>
</compile_context>

<pallas_src>
import functools
import math

import jax
import jax.numpy as jnp
from jax import lax
from jax.experimental import pallas as pl
from jax.experimental.pallas import tpu as pltpu


# --------------------------- in-kernel helpers -------------------------------

def _layernorm(x_f32, g, b, eps):
    """x_f32: (S, D) f32; g/b: (1, D).  nn.LayerNorm over the last dim."""
    mu = jnp.mean(x_f32, axis=-1, keepdims=True)
    var = jnp.mean((x_f32 - mu) ** 2, axis=-1, keepdims=True)
    return (x_f32 - mu) * lax.rsqrt(var + eps) * g + b


def _attend_and_project(q, k, v, wo, n_head, keep):
    """q/k/v: (S, D) f32 (q already scaled by 1/sqrt(dk)); wo: (D, D).

    Per-head attention with the output projection folded into the head loop:
        attn @ Wo == sum_h attn_h @ Wo[h*dk:(h+1)*dk, :]
    so no head concatenation / transpose is ever materialized.
    `keep` is either None (no mask) or an (S, S) bool keep-mask.
    """
    S, D = q.shape
    dk = D // n_head
    y = jnp.zeros((S, D), jnp.float32)
    for h in range(n_head):
        sl = slice(h * dk, (h + 1) * dk)
        s = jnp.dot(q[:, sl], k[:, sl].T, preferred_element_type=jnp.float32)
        if keep is not None:
            s = jnp.where(keep, s, jnp.float32(-1e9))
        s = s - jnp.max(s, axis=-1, keepdims=True)
        p = jnp.exp(s)
        # reciprocal on the EUP slot (effectively free under the MXU work)
        p = p * pl.reciprocal(jnp.sum(p, axis=-1, keepdims=True), approx=True)
        oh = jnp.dot(p, v[:, sl], preferred_element_type=jnp.float32)
        y = y + jnp.dot(oh, wo[sl, :], preferred_element_type=jnp.float32)
    return y


# -------------------------------- kernel --------------------------------------

def _decoder_layer_kernel(x_ref, enc_ref,
                          ln0_g, ln0_b, wqkv, bqkv, wo_s, bo_s,
                          ln1_g, ln1_b, wq_c, bq_c, wkv_c, bkv_c, wo_c, bo_c,
                          ln2_g, ln2_b, w1, b1, w2, b2,
                          o_ref, *, n_head, eps, causal):
    # x_ref / enc_ref / o_ref: (1, S, D)
    _, S, D = x_ref.shape
    x = x_ref[0].astype(jnp.float32)
    enc = enc_ref[0].astype(jnp.float32)
    scale = 1.0 / math.sqrt(D // n_head)

    if causal:
        row = lax.broadcasted_iota(jnp.int32, (S, S), 0)
        col = lax.broadcasted_iota(jnp.int32, (S, S), 1)
        causal_keep = col <= row
    else:
        causal_keep = None

    # ---- sublayer 0: masked self-attention (pre-norm + residual) ----
    h = _layernorm(x, ln0_g[...], ln0_b[...], eps)
    qkv = jnp.dot(h, wqkv[...], preferred_element_type=jnp.float32) + bqkv[...]
    q = qkv[:, 0 * D:1 * D] * scale            # fold 1/sqrt(dk) into q
    k = qkv[:, 1 * D:2 * D]
    v = qkv[:, 2 * D:3 * D]
    y = _attend_and_project(q, k, v, wo_s[...], n_head, causal_keep) + bo_s[...]
    x = x + y

    # ---- sublayer 1: cross-attention (q from x, k = v = enc_out) ----
    h = _layernorm(x, ln1_g[...], ln1_b[...], eps)
    q = (jnp.dot(h, wq_c[...], preferred_element_type=jnp.float32)
         + bq_c[...]) * scale
    kv = jnp.dot(enc, wkv_c[...], preferred_element_type=jnp.float32) + bkv_c[...]
    k = kv[:, :D]
    v = kv[:, D:]
    # memory_mask=None in the reference call -> no masking on cross-attention.
    y = _attend_and_project(q, k, v, wo_c[...], n_head, None) + bo_c[...]
    x = x + y

    # ---- sublayer 2: feed-forward ----
    h = _layernorm(x, ln2_g[...], ln2_b[...], eps)
    a = jnp.dot(h, w1[...], preferred_element_type=jnp.float32) + b1[...]
    a = jnp.maximum(a, 0.0)                    # keep f32 accumulator through ReLU
    y = jnp.dot(a, w2[...], preferred_element_type=jnp.float32) + b2[...]

    o_ref[0] = (x + y).astype(o_ref.dtype)


# ------------------------------ wrapper ---------------------------------------

def _act_spec(S, D):
    return pl.BlockSpec((1, S, D), lambda i: (i, 0, 0))


def _const_spec(shape):
    zeros = (0,) * len(shape)
    return pl.BlockSpec(shape, lambda i, _z=zeros: _z)   # constant block -> DMA'd once


def decoder_layer(x, enc_out, p, n_head, *, causal=True, eps=1e-5):
    B, S, D = x.shape
    a, e = p["attn"], p["enc_attn"]
    F_ = p["ffn_w1"].shape[1]

    kernel = functools.partial(_decoder_layer_kernel,
                               n_head=n_head, eps=eps, causal=causal)

    flops = B * (16 * S * D * D + 8 * S * S * D + 4 * S * D * F_)
    weight_elems = 8 * D * D + 2 * D * F_ + 10 * D + F_
    bytes_accessed = 4 * (3 * B * S * D + weight_elems)

    return pl.pallas_call(
        kernel,
        out_shape=jax.ShapeDtypeStruct((B, S, D), x.dtype),
        grid=(B,),
        in_specs=[
            _act_spec(S, D),                                   # x
            _act_spec(S, D),                                   # enc_out
            _const_spec((1, D)), _const_spec((1, D)),          # ln0
            _const_spec((D, 3 * D)), _const_spec((1, 3 * D)),  # wqkv, bqkv
            _const_spec((D, D)), _const_spec((1, D)),          # wo_s, bo_s
            _const_spec((1, D)), _const_spec((1, D)),          # ln1
            _const_spec((D, D)), _const_spec((1, D)),          # wq_c, bq_c
            _const_spec((D, 2 * D)), _const_spec((1, 2 * D)),  # wkv_c, bkv_c
            _const_spec((D, D)), _const_spec((1, D)),          # wo_c, bo_c
            _const_spec((1, D)), _const_spec((1, D)),          # ln2
            _const_spec((D, F_)), _const_spec((1, F_)),        # w1, b1
            _const_spec((F_, D)), _const_spec((1, D)),         # w2, b2
        ],
        out_specs=_act_spec(S, D),
        compiler_params=pltpu.CompilerParams(dimension_semantics=("parallel",)),
        cost_estimate=pl.CostEstimate(flops=flops,
                                      transcendentals=2 * B * n_head * S * S,
                                      bytes_accessed=bytes_accessed),
    )(x, enc_out,
      p["ln0_g"].reshape(1, D), p["ln0_b"].reshape(1, D),
      a["wqkv"], a["bqkv"].reshape(1, 3 * D),
      a["wo"], a["bo"].reshape(1, D),
      p["ln1_g"].reshape(1, D), p["ln1_b"].reshape(1, D),
      e["wq"], e["bq"].reshape(1, D),
      e["wkv"], e["bkv"].reshape(1, 2 * D),
      e["wo"], e["bo"].reshape(1, D),
      p["ln2_g"].reshape(1, D), p["ln2_b"].reshape(1, D),
      p["ffn_w1"], p["ffn_b1"].reshape(1, F_),
      p["ffn_w2"], p["ffn_b2"].reshape(1, D))


# --------------------------- param construction -------------------------------

def make_params(key, d_model, n_head, d_ffn):
    keys = jax.random.split(key, 16)
    s = 0.02

    def mha_params(ks):
        return {
            "wq": s * jax.random.normal(ks[0], (d_model, d_model), jnp.float32),
            "bq": jnp.zeros((d_model,), jnp.float32),
            "wk": s * jax.random.normal(ks[1], (d_model, d_model), jnp.float32),
            "bk": jnp.zeros((d_model,), jnp.float32),
            "wv": s * jax.random.normal(ks[2], (d_model, d_model), jnp.float32),
            "bv": jnp.zeros((d_model,), jnp.float32),
            "wo": s * jax.random.normal(ks[3], (d_model, d_model), jnp.float32),
            "bo": jnp.zeros((d_model,), jnp.float32),
        }

    return {
        "attn": mha_params(keys[0:4]),
        "enc_attn": mha_params(keys[4:8]),
        "ffn_w1": s * jax.random.normal(keys[8], (d_model, d_ffn), jnp.float32),
        "ffn_b1": jnp.zeros((d_ffn,), jnp.float32),
        "ffn_w2": s * jax.random.normal(keys[9], (d_ffn, d_model), jnp.float32),
        "ffn_b2": jnp.zeros((d_model,), jnp.float32),
        "ln0_g": jnp.ones((d_model,), jnp.float32),
        "ln0_b": jnp.zeros((d_model,), jnp.float32),
        "ln1_g": jnp.ones((d_model,), jnp.float32),
        "ln1_b": jnp.zeros((d_model,), jnp.float32),
        "ln2_g": jnp.ones((d_model,), jnp.float32),
        "ln2_b": jnp.zeros((d_model,), jnp.float32),
    }


def pack_params(p):
    """Concatenate projection weights ONCE (outside jit) for fused matmuls."""
    a, e = p["attn"], p["enc_attn"]
    packed = dict(p)
    packed["attn"] = {
        "wqkv": jnp.concatenate([a["wq"], a["wk"], a["wv"]], axis=1),
        "bqkv": jnp.concatenate([a["bq"], a["bk"], a["bv"]]),
        "wo": a["wo"], "bo": a["bo"],
    }
    packed["enc_attn"] = {
        "wq": e["wq"], "bq": e["bq"],
        "wkv": jnp.concatenate([e["wk"], e["wv"]], axis=1),
        "bkv": jnp.concatenate([e["bk"], e["bv"]]),
        "wo": e["wo"], "bo": e["bo"],
    }
    return packed


# -------------------------- pure-JAX reference ---------------------------------

def _ref_decoder_layer(x, enc_out, p, n_head, eps=1e-5):
    def ln(z, g, b):
        mu = z.mean(-1, keepdims=True)
        var = ((z - mu) ** 2).mean(-1, keepdims=True)
        return (z - mu) / jnp.sqrt(var + eps) * g + b

    def mha(qi, ki, vi, w, mask):
        B, S, D = qi.shape
        dk = D // n_head

        def split(t):
            return t.reshape(B, S, n_head, dk).transpose(0, 2, 1, 3)

        q = split(qi @ w["wq"] + w["bq"])
        k = split(ki @ w["wk"] + w["bk"])
        v = split(vi @ w["wv"] + w["bv"])
        s = jnp.einsum("bhqd,bhkd->bhqk", q, k) / math.sqrt(dk)
        if mask is not None:
            s = jnp.where(mask, s, -1e9)
        a = jax.nn.softmax(s, axis=-1)
        o = jnp.einsum("bhqk,bhkd->bhqd", a, v)
        o = o.transpose(0, 2, 1, 3).reshape(B, S, D)
        return o @ w["wo"] + w["bo"]

    B, S, D = x.shape
    causal = jnp.tril(jnp.ones((S, S), bool))[None, None]
    h = ln(x, p["ln0_g"], p["ln0_b"])
    x = x + mha(h, h, h, p["attn"], causal)
    h = ln(x, p["ln1_g"], p["ln1_b"])
    x = x + mha(h, enc_out, enc_out, p["enc_attn"], None)
    h = ln(x, p["ln2_g"], p["ln2_b"])
    y = jnp.maximum(h @ p["ffn_w1"] + p["ffn_b1"], 0.0) @ p["ffn_w2"] + p["ffn_b2"]
    return x + y


# --------------------------------- main ---------------------------------------

if __name__ == "__main__":
    B, S, D = 2, 8, 32          # batch, seq_len, d_model
    n_head, d_ffn = 4, 64

    key = jax.random.PRNGKey(0)
    kx, ke, kp = jax.random.split(key, 3)
    x = jax.random.normal(kx, (B, S, D), jnp.float32)
    enc_out = jax.random.normal(ke, (B, S, D), jnp.float32)
    raw_params = make_params(kp, D, n_head, d_ffn)
    params = pack_params(raw_params)

    fwd = jax.jit(functools.partial(decoder_layer, n_head=n_head))
    out = fwd(x, enc_out, params)
    jax.block_until_ready(out)

    assert out.shape == (B, S, D) and out.dtype == jnp.float32

    ref = _ref_decoder_layer(x, enc_out, raw_params, n_head)
    assert jnp.max(jnp.abs(out - ref)) < 2e-2, float(jnp.max(jnp.abs(out - ref)))

    print("KERNEL_OK")
</pallas_src>

<mosaic_0001>
module attributes {stable_mosaic.version = 11 : i64} {
  func.func @_decoder_layer_kernel(%arg0: i32, %arg1: memref<1x8x32xf32, #tpu.memory_space<vmem>>, %arg2: memref<1x8x32xf32, #tpu.memory_space<vmem>>, %arg3: memref<1x32xf32, #tpu.memory_space<vmem>>, %arg4: memref<1x32xf32, #tpu.memory_space<vmem>>, %arg5: memref<32x96xf32, #tpu.memory_space<vmem>>, %arg6: memref<1x96xf32, #tpu.memory_space<vmem>>, %arg7: memref<32x32xf32, #tpu.memory_space<vmem>>, %arg8: memref<1x32xf32, #tpu.memory_space<vmem>>, %arg9: memref<1x32xf32, #tpu.memory_space<vmem>>, %arg10: memref<1x32xf32, #tpu.memory_space<vmem>>, %arg11: memref<32x32xf32, #tpu.memory_space<vmem>>, %arg12: memref<1x32xf32, #tpu.memory_space<vmem>>, %arg13: memref<32x64xf32, #tpu.memory_space<vmem>>, %arg14: memref<1x64xf32, #tpu.memory_space<vmem>>, %arg15: memref<32x32xf32, #tpu.memory_space<vmem>>, %arg16: memref<1x32xf32, #tpu.memory_space<vmem>>, %arg17: memref<1x32xf32, #tpu.memory_space<vmem>>, %arg18: memref<1x32xf32, #tpu.memory_space<vmem>>, %arg19: memref<32x64xf32, #tpu.memory_space<vmem>>, %arg20: memref<1x64xf32, #tpu.memory_space<vmem>>, %arg21: memref<64x32xf32, #tpu.memory_space<vmem>>, %arg22: memref<1x32xf32, #tpu.memory_space<vmem>>, %arg23: memref<1x8x32xf32, #tpu.memory_space<vmem>>) attributes {dimension_semantics = [#tpu.dimension_semantics<parallel>], iteration_bounds = array<i64: 2>, scalar_prefetch = 0 : i64, scratch_operands = 0 : i64, tpu.core_type = #tpu.core_type<tc>, window_params = [{transform_indices = @transform_0, window_bounds = array<i64: 1, 8, 32>}, {transform_indices = @transform_1, window_bounds = array<i64: 1, 8, 32>}, {pipeline_mode = #tpu.pipeline_mode<synchronous>, transform_indices = @transform_2, window_bounds = array<i64: 1, 32>}, {pipeline_mode = #tpu.pipeline_mode<synchronous>, transform_indices = @transform_3, window_bounds = array<i64: 1, 32>}, {pipeline_mode = #tpu.pipeline_mode<synchronous>, transform_indices = @transform_4, window_bounds = array<i64: 32, 96>}, {pipeline_mode = #tpu.pipeline_mode<synchronous>, transform_indices = @transform_5, window_bounds = array<i64: 1, 96>}, {pipeline_mode = #tpu.pipeline_mode<synchronous>, transform_indices = @transform_6, window_bounds = array<i64: 32, 32>}, {pipeline_mode = #tpu.pipeline_mode<synchronous>, transform_indices = @transform_7, window_bounds = array<i64: 1, 32>}, {pipeline_mode = #tpu.pipeline_mode<synchronous>, transform_indices = @transform_8, window_bounds = array<i64: 1, 32>}, {pipeline_mode = #tpu.pipeline_mode<synchronous>, transform_indices = @transform_9, window_bounds = array<i64: 1, 32>}, {pipeline_mode = #tpu.pipeline_mode<synchronous>, transform_indices = @transform_10, window_bounds = array<i64: 32, 32>}, {pipeline_mode = #tpu.pipeline_mode<synchronous>, transform_indices = @transform_11, window_bounds = array<i64: 1, 32>}, {pipeline_mode = #tpu.pipeline_mode<synchronous>, transform_indices = @transform_12, window_bounds = array<i64: 32, 64>}, {pipeline_mode = #tpu.pipeline_mode<synchronous>, transform_indices = @transform_13, window_bounds = array<i64: 1, 64>}, {pipeline_mode = #tpu.pipeline_mode<synchronous>, transform_indices = @transform_14, window_bounds = array<i64: 32, 32>}, {pipeline_mode = #tpu.pipeline_mode<synchronous>, transform_indices = @transform_15, window_bounds = array<i64: 1, 32>}, {pipeline_mode = #tpu.pipeline_mode<synchronous>, transform_indices = @transform_16, window_bounds = array<i64: 1, 32>}, {pipeline_mode = #tpu.pipeline_mode<synchronous>, transform_indices = @transform_17, window_bounds = array<i64: 1, 32>}, {pipeline_mode = #tpu.pipeline_mode<synchronous>, transform_indices = @transform_18, window_bounds = array<i64: 32, 64>}, {pipeline_mode = #tpu.pipeline_mode<synchronous>, transform_indices = @transform_19, window_bounds = array<i64: 1, 64>}, {pipeline_mode = #tpu.pipeline_mode<synchronous>, transform_indices = @transform_20, window_bounds = array<i64: 64, 32>}, {pipeline_mode = #tpu.pipeline_mode<synchronous>, transform_indices = @transform_21, window_bounds = array<i64: 1, 32>}, {transform_indices = @transform_22, window_bounds = array<i64: 1, 8, 32>}]} {
    %c0 = arith.constant 0 : index
    %c0_0 = arith.constant 0 : index
    %c0_1 = arith.constant 0 : index
    %0 = vector.load %arg1[%c0, %c0_0, %c0_1] : memref<1x8x32xf32, #tpu.memory_space<vmem>>, vector<1x8x32xf32>
    %1 = vector.shape_cast %0 : vector<1x8x32xf32> to vector<8x32xf32>
    %c0_2 = arith.constant 0 : index
    %c0_3 = arith.constant 0 : index
    %c0_4 = arith.constant 0 : index
    %2 = vector.load %arg2[%c0_2, %c0_3, %c0_4] : memref<1x8x32xf32, #tpu.memory_space<vmem>>, vector<1x8x32xf32>
    %3 = vector.shape_cast %2 : vector<1x8x32xf32> to vector<8x32xf32>
    %4 = tpu.iota {dimensions = array<i32: 0>} : vector<8x8xi32>
    %5 = tpu.iota {dimensions = array<i32: 1>} : vector<8x8xi32>
    %6 = arith.cmpi sle, %5, %4 : vector<8x8xi32>
    %c0_5 = arith.constant 0 : index
    %c0_6 = arith.constant 0 : index
    %7 = vector.load %arg3[%c0_5, %c0_6] : memref<1x32xf32, #tpu.memory_space<vmem>>, vector<1x32xf32>
    %c0_7 = arith.constant 0 : index
    %c0_8 = arith.constant 0 : index
    %8 = vector.load %arg4[%c0_7, %c0_8] : memref<1x32xf32, #tpu.memory_space<vmem>>, vector<1x32xf32>
    %cst = arith.constant dense<0.000000e+00> : vector<8xf32>
    %9 = vector.multi_reduction <add>, %1, %cst [1] : vector<8x32xf32> to vector<8xf32>
    %10 = vector.shape_cast %9 : vector<8xf32> to vector<8x1xf32>
    %cst_9 = arith.constant 3.200000e+01 : f32
    %11 = vector.broadcast %cst_9 : f32 to vector<8x1xf32>
    %12 = arith.divf %10, %11 : vector<8x1xf32>
    %13 = vector.broadcast %12 : vector<8x1xf32> to vector<8x32xf32>
    %14 = arith.subf %1, %13 : vector<8x32xf32>
    %15 = arith.mulf %14, %14 : vector<8x32xf32>
    %cst_10 = arith.constant dense<0.000000e+00> : vector<8xf32>
    %16 = vector.multi_reduction <add>, %15, %cst_10 [1] : vector<8x32xf32> to vector<8xf32>
    %17 = vector.shape_cast %16 : vector<8xf32> to vector<8x1xf32>
    %cst_11 = arith.constant 3.200000e+01 : f32
    %18 = vector.broadcast %cst_11 : f32 to vector<8x1xf32>
    %19 = arith.divf %17, %18 : vector<8x1xf32>
    %20 = vector.broadcast %12 : vector<8x1xf32> to vector<8x32xf32>
    %21 = arith.subf %1, %20 : vector<8x32xf32>
    %cst_12 = arith.constant 9.99999974E-6 : f32
    %22 = vector.broadcast %cst_12 : f32 to vector<8x1xf32>
    %23 = arith.addf %19, %22 : vector<8x1xf32>
    %24 = math.rsqrt %23 : vector<8x1xf32>
    %25 = vector.broadcast %24 : vector<8x1xf32> to vector<8x32xf32>
    %26 = arith.mulf %21, %25 : vector<8x32xf32>
    %27 = vector.broadcast %7 : vector<1x32xf32> to vector<8x32xf32>
    %28 = arith.mulf %26, %27 : vector<8x32xf32>
    %29 = vector.broadcast %8 : vector<1x32xf32> to vector<8x32xf32>
    %30 = arith.addf %28, %29 : vector<8x32xf32>
    %c0_13 = arith.constant 0 : index
    %c0_14 = arith.constant 0 : index
    %31 = vector.load %arg5[%c0_13, %c0_14] : memref<32x96xf32, #tpu.memory_space<vmem>>, vector<32x96xf32>
    %cst_15 = arith.constant dense<0.000000e+00> : vector<8x96xf32>
    %32 = tpu.matmul %30, %31, %cst_15 {dimension_numbers = #tpu.dot_dimension_numbers<[1], [0], [0], [1], [0, 0, 1, 1], [], []>} : vector<8x32xf32>, vector<32x96xf32>, vector<8x96xf32> -> vector<8x96xf32>
    %c0_16 = arith.constant 0 : index
    %c0_17 = arith.constant 0 : index
    %33 = vector.load %arg6[%c0_16, %c0_17] : memref<1x96xf32, #tpu.memory_space<vmem>>, vector<1x96xf32>
    %34 = vector.broadcast %33 : vector<1x96xf32> to vector<8x96xf32>
    %35 = arith.addf %32, %34 : vector<8x96xf32>
    %36 = vector.extract_strided_slice %35 {offsets = [0, 0], sizes = [8, 32], strides = [1, 1]} : vector<8x96xf32> to vector<8x32xf32>
    %cst_18 = arith.constant 0.353553385 : f32
    %37 = vector.broadcast %cst_18 : f32 to vector<8x32xf32>
    %38 = arith.mulf %36, %37 : vector<8x32xf32>
    %39 = vector.extract_strided_slice %35 {offsets = [0, 32], sizes = [8, 32], strides = [1, 1]} : vector<8x96xf32> to vector<8x32xf32>
    %40 = vector.extract_strided_slice %35 {offsets = [0, 64], sizes = [8, 32], strides = [1, 1]} : vector<8x96xf32> to vector<8x32xf32>
    %c0_19 = arith.constant 0 : index
    %c0_20 = arith.constant 0 : index
    %41 = vector.load %arg7[%c0_19, %c0_20] : memref<32x32xf32, #tpu.memory_space<vmem>>, vector<32x32xf32>
    %cst_21 = arith.constant 0.000000e+00 : f32
    %42 = vector.broadcast %cst_21 : f32 to vector<8x32xf32>
    %43 = vector.extract_strided_slice %38 {offsets = [0, 0], sizes = [8, 8], strides = [1, 1]} : vector<8x32xf32> to vector<8x8xf32>
    %44 = vector.extract_strided_slice %39 {offsets = [0, 0], sizes = [8, 8], strides = [1, 1]} : vector<8x32xf32> to vector<8x8xf32>
    %45 = tpu.transpose %44, [1, 0] : vector<8x8xf32> -> vector<8x8xf32>
    %cst_22 = arith.constant dense<0.000000e+00> : vector<8x8xf32>
    %46 = tpu.matmul %43, %45, %cst_22 {dimension_numbers = #tpu.dot_dimension_numbers<[1], [0], [0], [1], [0, 0, 1, 1], [], []>} : vector<8x8xf32>, vector<8x8xf32>, vector<8x8xf32> -> vector<8x8xf32>
    %cst_23 = arith.constant -1.000000e+09 : f32
    %47 = vector.broadcast %cst_23 : f32 to vector<8x8xf32>
    %48 = arith.select %6, %46, %47 : vector<8x8xi1>, vector<8x8xf32>
    %cst_24 = arith.constant dense<0xFF800000> : vector<8xf32>
    %49 = vector.multi_reduction <maximumf>, %48, %cst_24 [1] : vector<8x8xf32> to vector<8xf32>
    %50 = vector.shape_cast %49 : vector<8xf32> to vector<8x1xf32>
    %51 = vector.broadcast %50 : vector<8x1xf32> to vector<8x8xf32>
    %52 = arith.subf %48, %51 : vector<8x8xf32>
    %53 = math.exp %52 : vector<8x8xf32>
    %cst_25 = arith.constant dense<0.000000e+00> : vector<8xf32>
    %54 = vector.multi_reduction <add>, %53, %cst_25 [1] : vector<8x8xf32> to vector<8xf32>
    %55 = vector.shape_cast %54 : vector<8xf32> to vector<8x1xf32>
    %56 = tpu.reciprocal %55 {approx = true} : vector<8x1xf32> -> vector<8x1xf32>
    %57 = vector.broadcast %56 : vector<8x1xf32> to vector<8x8xf32>
    %58 = arith.mulf %53, %57 : vector<8x8xf32>
    %59 = vector.extract_strided_slice %40 {offsets = [0, 0], sizes = [8, 8], strides = [1, 1]} : vector<8x32xf32> to vector<8x8xf32>
    %cst_26 = arith.constant dense<0.000000e+00> : vector<8x8xf32>
    %60 = tpu.matmul %58, %59, %cst_26 {dimension_numbers = #tpu.dot_dimension_numbers<[1], [0], [0], [1], [0, 0, 1, 1], [], []>} : vector<8x8xf32>, vector<8x8xf32>, vector<8x8xf32> -> vector<8x8xf32>
    %61 = vector.extract_strided_slice %41 {offsets = [0, 0], sizes = [8, 32], strides = [1, 1]} : vector<32x32xf32> to vector<8x32xf32>
    %cst_27 = arith.constant dense<0.000000e+00> : vector<8x32xf32>
    %62 = tpu.matmul %60, %61, %cst_27 {dimension_numbers = #tpu.dot_dimension_numbers<[1], [0], [0], [1], [0, 0, 1, 1], [], []>} : vector<8x8xf32>, vector<8x32xf32>, vector<8x32xf32> -> vector<8x32xf32>
    %63 = arith.addf %42, %62 : vector<8x32xf32>
    %64 = vector.extract_strided_slice %38 {offsets = [0, 8], sizes = [8, 8], strides = [1, 1]} : vector<8x32xf32> to vector<8x8xf32>
    %65 = vector.extract_strided_slice %39 {offsets = [0, 8], sizes = [8, 8], strides = [1, 1]} : vector<8x32xf32> to vector<8x8xf32>
    %66 = tpu.transpose %65, [1, 0] : vector<8x8xf32> -> vector<8x8xf32>
    %cst_28 = arith.constant dense<0.000000e+00> : vector<8x8xf32>
    %67 = tpu.matmul %64, %66, %cst_28 {dimension_numbers = #tpu.dot_dimension_numbers<[1], [0], [0], [1], [0, 0, 1, 1], [], []>} : vector<8x8xf32>, vector<8x8xf32>, vector<8x8xf32> -> vector<8x8xf32>
    %cst_29 = arith.constant -1.000000e+09 : f32
    %68 = vector.broadcast %cst_29 : f32 to vector<8x8xf32>
    %69 = arith.select %6, %67, %68 : vector<8x8xi1>, vector<8x8xf32>
    %cst_30 = arith.constant dense<0xFF800000> : vector<8xf32>
    %70 = vector.multi_reduction <maximumf>, %69, %cst_30 [1] : vector<8x8xf32> to vector<8xf32>
    %71 = vector.shape_cast %70 : vector<8xf32> to vector<8x1xf32>
    %72 = vector.broadcast %71 : vector<8x1xf32> to vector<8x8xf32>
    %73 = arith.subf %69, %72 : vector<8x8xf32>
    %74 = math.exp %73 : vector<8x8xf32>
    %cst_31 = arith.constant dense<0.000000e+00> : vector<8xf32>
    %75 = vector.multi_reduction <add>, %74, %cst_31 [1] : vector<8x8xf32> to vector<8xf32>
    %76 = vector.shape_cast %75 : vector<8xf32> to vector<8x1xf32>
    %77 = tpu.reciprocal %76 {approx = true} : vector<8x1xf32> -> vector<8x1xf32>
    %78 = vector.broadcast %77 : vector<8x1xf32> to vector<8x8xf32>
    %79 = arith.mulf %74, %78 : vector<8x8xf32>
    %80 = vector.extract_strided_slice %40 {offsets = [0, 8], sizes = [8, 8], strides = [1, 1]} : vector<8x32xf32> to vector<8x8xf32>
    %cst_32 = arith.constant dense<0.000000e+00> : vector<8x8xf32>
    %81 = tpu.matmul %79, %80, %cst_32 {dimension_numbers = #tpu.dot_dimension_numbers<[1], [0], [0], [1], [0, 0, 1, 1], [], []>} : vector<8x8xf32>, vector<8x8xf32>, vector<8x8xf32> -> vector<8x8xf32>
    %82 = vector.extract_strided_slice %41 {offsets = [8, 0], sizes = [8, 32], strides = [1, 1]} : vector<32x32xf32> to vector<8x32xf32>
    %cst_33 = arith.constant dense<0.000000e+00> : vector<8x32xf32>
    %83 = tpu.matmul %81, %82, %cst_33 {dimension_numbers = #tpu.dot_dimension_numbers<[1], [0], [0], [1], [0, 0, 1, 1], [], []>} : vector<8x8xf32>, vector<8x32xf32>, vector<8x32xf32> -> vector<8x32xf32>
    %84 = arith.addf %63, %83 : vector<8x32xf32>
    %85 = vector.extract_strided_slice %38 {offsets = [0, 16], sizes = [8, 8], strides = [1, 1]} : vector<8x32xf32> to vector<8x8xf32>
    %86 = vector.extract_strided_slice %39 {offsets = [0, 16], sizes = [8, 8], strides = [1, 1]} : vector<8x32xf32> to vector<8x8xf32>
    %87 = tpu.transpose %86, [1, 0] : vector<8x8xf32> -> vector<8x8xf32>
    %cst_34 = arith.constant dense<0.000000e+00> : vector<8x8xf32>
    %88 = tpu.matmul %85, %87, %cst_34 {dimension_numbers = #tpu.dot_dimension_numbers<[1], [0], [0], [1], [0, 0, 1, 1], [], []>} : vector<8x8xf32>, vector<8x8xf32>, vector<8x8xf32> -> vector<8x8xf32>
    %cst_35 = arith.constant -1.000000e+09 : f32
    %89 = vector.broadcast %cst_35 : f32 to vector<8x8xf32>
    %90 = arith.select %6, %88, %89 : vector<8x8xi1>, vector<8x8xf32>
    %cst_36 = arith.constant dense<0xFF800000> : vector<8xf32>
    %91 = vector.multi_reduction <maximumf>, %90, %cst_36 [1] : vector<8x8xf32> to vector<8xf32>
    %92 = vector.shape_cast %91 : vector<8xf32> to vector<8x1xf32>
    %93 = vector.broadcast %92 : vector<8x1xf32> to vector<8x8xf32>
    %94 = arith.subf %90, %93 : vector<8x8xf32>
    %95 = math.exp %94 : vector<8x8xf32>
    %cst_37 = arith.constant dense<0.000000e+00> : vector<8xf32>
    %96 = vector.multi_reduction <add>, %95, %cst_37 [1] : vector<8x8xf32> to vector<8xf32>
    %97 = vector.shape_cast %96 : vector<8xf32> to vector<8x1xf32>
    %98 = tpu.reciprocal %97 {approx = true} : vector<8x1xf32> -> vector<8x1xf32>
    %99 = vector.broadcast %98 : vector<8x1xf32> to vector<8x8xf32>
    %100 = arith.mulf %95, %99 : vector<8x8xf32>
    %101 = vector.extract_strided_slice %40 {offsets = [0, 16], sizes = [8, 8], strides = [1, 1]} : vector<8x32xf32> to vector<8x8xf32>
    %cst_38 = arith.constant dense<0.000000e+00> : vector<8x8xf32>
    %102 = tpu.matmul %100, %101, %cst_38 {dimension_numbers = #tpu.dot_dimension_numbers<[1], [0], [0], [1], [0, 0, 1, 1], [], []>} : vector<8x8xf32>, vector<8x8xf32>, vector<8x8xf32> -> vector<8x8xf32>
    %103 = vector.extract_strided_slice %41 {offsets = [16, 0], sizes = [8, 32], strides = [1, 1]} : vector<32x32xf32> to vector<8x32xf32>
    %cst_39 = arith.constant dense<0.000000e+00> : vector<8x32xf32>
    %104 = tpu.matmul %102, %103, %cst_39 {dimension_numbers = #tpu.dot_dimension_numbers<[1], [0], [0], [1], [0, 0, 1, 1], [], []>} : vector<8x8xf32>, vector<8x32xf32>, vector<8x32xf32> -> vector<8x32xf32>
    %105 = arith.addf %84, %104 : vector<8x32xf32>
    %106 = vector.extract_strided_slice %38 {offsets = [0, 24], sizes = [8, 8], strides = [1, 1]} : vector<8x32xf32> to vector<8x8xf32>
    %107 = vector.extract_strided_slice %39 {offsets = [0, 24], sizes = [8, 8], strides = [1, 1]} : vector<8x32xf32> to vector<8x8xf32>
    %108 = tpu.transpose %107, [1, 0] : vector<8x8xf32> -> vector<8x8xf32>
    %cst_40 = arith.constant dense<0.000000e+00> : vector<8x8xf32>
    %109 = tpu.matmul %106, %108, %cst_40 {dimension_numbers = #tpu.dot_dimension_numbers<[1], [0], [0], [1], [0, 0, 1, 1], [], []>} : vector<8x8xf32>, vector<8x8xf32>, vector<8x8xf32> -> vector<8x8xf32>
    %cst_41 = arith.constant -1.000000e+09 : f32
    %110 = vector.broadcast %cst_41 : f32 to vector<8x8xf32>
    %111 = arith.select %6, %109, %110 : vector<8x8xi1>, vector<8x8xf32>
    %cst_42 = arith.constant dense<0xFF800000> : vector<8xf32>
    %112 = vector.multi_reduction <maximumf>, %111, %cst_42 [1] : vector<8x8xf32> to vector<8xf32>
    %113 = vector.shape_cast %112 : vector<8xf32> to vector<8x1xf32>
    %114 = vector.broadcast %113 : vector<8x1xf32> to vector<8x8xf32>
    %115 = arith.subf %111, %114 : vector<8x8xf32>
    %116 = math.exp %115 : vector<8x8xf32>
    %cst_43 = arith.constant dense<0.000000e+00> : vector<8xf32>
    %117 = vector.multi_reduction <add>, %116, %cst_43 [1] : vector<8x8xf32> to vector<8xf32>
    %118 = vector.shape_cast %117 : vector<8xf32> to vector<8x1xf32>
    %119 = tpu.reciprocal %118 {approx = true} : vector<8x1xf32> -> vector<8x1xf32>
    %120 = vector.broadcast %119 : vector<8x1xf32> to vector<8x8xf32>
    %121 = arith.mulf %116, %120 : vector<8x8xf32>
    %122 = vector.extract_strided_slice %40 {offsets = [0, 24], sizes = [8, 8], strides = [1, 1]} : vector<8x32xf32> to vector<8x8xf32>
    %cst_44 = arith.constant dense<0.000000e+00> : vector<8x8xf32>
    %123 = tpu.matmul %121, %122, %cst_44 {dimension_numbers = #tpu.dot_dimension_numbers<[1], [0], [0], [1], [0, 0, 1, 1], [], []>} : vector<8x8xf32>, vector<8x8xf32>, vector<8x8xf32> -> vector<8x8xf32>
    %124 = vector.extract_strided_slice %41 {offsets = [24, 0], sizes = [8, 32], strides = [1, 1]} : vector<32x32xf32> to vector<8x32xf32>
    %cst_45 = arith.constant dense<0.000000e+00> : vector<8x32xf32>
    %125 = tpu.matmul %123, %124, %cst_45 {dimension_numbers = #tpu.dot_dimension_numbers<[1], [0], [0], [1], [0, 0, 1, 1], [], []>} : vector<8x8xf32>, vector<8x32xf32>, vector<8x32xf32> -> vector<8x32xf32>
    %126 = arith.addf %105, %125 : vector<8x32xf32>
    %c0_46 = arith.constant 0 : index
    %c0_47 = arith.constant 0 : index
    %127 = vector.load %arg8[%c0_46, %c0_47] : memref<1x32xf32, #tpu.memory_space<vmem>>, vector<1x32xf32>
    %128 = vector.broadcast %127 : vector<1x32xf32> to vector<8x32xf32>
    %129 = arith.addf %126, %128 : vector<8x32xf32>
    %130 = arith.addf %1, %129 : vector<8x32xf32>
    %c0_48 = arith.constant 0 : index
    %c0_49 = arith.constant 0 : index
    %131 = vector.load %arg9[%c0_48, %c0_49] : memref<1x32xf32, #tpu.memory_space<vmem>>, vector<1x32xf32>
    %c0_50 = arith.constant 0 : index
    %c0_51 = arith.constant 0 : index
    %132 = vector.load %arg10[%c0_50, %c0_51] : memref<1x32xf32, #tpu.memory_space<vmem>>, vector<1x32xf32>
    %cst_52 = arith.constant dense<0.000000e+00> : vector<8xf32>
    %133 = vector.multi_reduction <add>, %130, %cst_52 [1] : vector<8x32xf32> to vector<8xf32>
    %134 = vector.shape_cast %133 : vector<8xf32> to vector<8x1xf32>
    %cst_53 = arith.constant 3.200000e+01 : f32
    %135 = vector.broadcast %cst_53 : f32 to vector<8x1xf32>
    %136 = arith.divf %134, %135 : vector<8x1xf32>
    %137 = vector.broadcast %136 : vector<8x1xf32> to vector<8x32xf32>
    %138 = arith.subf %130, %137 : vector<8x32xf32>
    %139 = arith.mulf %138, %138 : vector<8x32xf32>
    %cst_54 = arith.constant dense<0.000000e+00> : vector<8xf32>
    %140 = vector.multi_reduction <add>, %139, %cst_54 [1] : vector<8x32xf32> to vector<8xf32>
    %141 = vector.shape_cast %140 : vector<8xf32> to vector<8x1xf32>
    %cst_55 = arith.constant 3.200000e+01 : f32
    %142 = vector.broadcast %cst_55 : f32 to vector<8x1xf32>
    %143 = arith.divf %141, %142 : vector<8x1xf32>
    %144 = vector.broadcast %136 : vector<8x1xf32> to vector<8x32xf32>
    %145 = arith.subf %130, %144 : vector<8x32xf32>
    %cst_56 = arith.constant 9.99999974E-6 : f32
    %146 = vector.broadcast %cst_56 : f32 to vector<8x1xf32>
    %147 = arith.addf %143, %146 : vector<8x1xf32>
    %148 = math.rsqrt %147 : vector<8x1xf32>
    %149 = vector.broadcast %148 : vector<8x1xf32> to vector<8x32xf32>
    %150 = arith.mulf %145, %149 : vector<8x32xf32>
    %151 = vector.broadcast %131 : vector<1x32xf32> to vector<8x32xf32>
    %152 = arith.mulf %150, %151 : vector<8x32xf32>
    %153 = vector.broadcast %132 : vector<1x32xf32> to vector<8x32xf32>
    %154 = arith.addf %152, %153 : vector<8x32xf32>
    %c0_57 = arith.constant 0 : index
    %c0_58 = arith.constant 0 : index
    %155 = vector.load %arg11[%c0_57, %c0_58] : memref<32x32xf32, #tpu.memory_space<vmem>>, vector<32x32xf32>
    %cst_59 = arith.constant dense<0.000000e+00> : vector<8x32xf32>
    %156 = tpu.matmul %154, %155, %cst_59 {dimension_numbers = #tpu.dot_dimension_numbers<[1], [0], [0], [1], [0, 0, 1, 1], [], []>} : vector<8x32xf32>, vector<32x32xf32>, vector<8x32xf32> -> vector<8x32xf32>
    %c0_60 = arith.constant 0 : index
    %c0_61 = arith.constant 0 : index
    %157 = vector.load %arg12[%c0_60, %c0_61] : memref<1x32xf32, #tpu.memory_space<vmem>>, vector<1x32xf32>
    %158 = vector.broadcast %157 : vector<1x32xf32> to vector<8x32xf32>
    %159 = arith.addf %156, %158 : vector<8x32xf32>
    %cst_62 = arith.constant 0.353553385 : f32
    %160 = vector.broadcast %cst_62 : f32 to vector<8x32xf32>
    %161 = arith.mulf %159, %160 : vector<8x32xf32>
    %c0_63 = arith.constant 0 : index
    %c0_64 = arith.constant 0 : index
    %162 = vector.load %arg13[%c0_63, %c0_64] : memref<32x64xf32, #tpu.memory_space<vmem>>, vector<32x64xf32>
    %cst_65 = arith.constant dense<0.000000e+00> : vector<8x64xf32>
    %163 = tpu.matmul %3, %162, %cst_65 {dimension_numbers = #tpu.dot_dimension_numbers<[1], [0], [0], [1], [0, 0, 1, 1], [], []>} : vector<8x32xf32>, vector<32x64xf32>, vector<8x64xf32> -> vector<8x64xf32>
    %c0_66 = arith.constant 0 : index
    %c0_67 = arith.constant 0 : index
    %164 = vector.load %arg14[%c0_66, %c0_67] : memref<1x64xf32, #tpu.memory_space<vmem>>, vector<1x64xf32>
    %165 = vector.broadcast %164 : vector<1x64xf32> to vector<8x64xf32>
    %166 = arith.addf %163, %165 : vector<8x64xf32>
    %167 = vector.extract_strided_slice %166 {offsets = [0, 0], sizes = [8, 32], strides = [1, 1]} : vector<8x64xf32> to vector<8x32xf32>
    %168 = vector.extract_strided_slice %166 {offsets = [0, 32], sizes = [8, 32], strides = [1, 1]} : vector<8x64xf32> to vector<8x32xf32>
    %c0_68 = arith.constant 0 : index
    %c0_69 = arith.constant 0 : index
    %169 = vector.load %arg15[%c0_68, %c0_69] : memref<32x32xf32, #tpu.memory_space<vmem>>, vector<32x32xf32>
    %cst_70 = arith.constant 0.000000e+00 : f32
    %170 = vector.broadcast %cst_70 : f32 to vector<8x32xf32>
    %171 = vector.extract_strided_slice %161 {offsets = [0, 0], sizes = [8, 8], strides = [1, 1]} : vector<8x32xf32> to vector<8x8xf32>
    %172 = vector.extract_strided_slice %167 {offsets = [0, 0], sizes = [8, 8], strides = [1, 1]} : vector<8x32xf32> to vector<8x8xf32>
    %173 = tpu.transpose %172, [1, 0] : vector<8x8xf32> -> vector<8x8xf32>
    %cst_71 = arith.constant dense<0.000000e+00> : vector<8x8xf32>
    %174 = tpu.matmul %171, %173, %cst_71 {dimension_numbers = #tpu.dot_dimension_numbers<[1], [0], [0], [1], [0, 0, 1, 1], [], []>} : vector<8x8xf32>, vector<8x8xf32>, vector<8x8xf32> -> vector<8x8xf32>
    %cst_72 = arith.constant dense<0xFF800000> : vector<8xf32>
    %175 = vector.multi_reduction <maximumf>, %174, %cst_72 [1] : vector<8x8xf32> to vector<8xf32>
    %176 = vector.shape_cast %175 : vector<8xf32> to vector<8x1xf32>
    %177 = vector.broadcast %176 : vector<8x1xf32> to vector<8x8xf32>
    %178 = arith.subf %174, %177 : vector<8x8xf32>
    %179 = math.exp %178 : vector<8x8xf32>
    %cst_73 = arith.constant dense<0.000000e+00> : vector<8xf32>
    %180 = vector.multi_reduction <add>, %179, %cst_73 [1] : vector<8x8xf32> to vector<8xf32>
    %181 = vector.shape_cast %180 : vector<8xf32> to vector<8x1xf32>
    %182 = tpu.reciprocal %181 {approx = true} : vector<8x1xf32> -> vector<8x1xf32>
    %183 = vector.broadcast %182 : vector<8x1xf32> to vector<8x8xf32>
    %184 = arith.mulf %179, %183 : vector<8x8xf32>
    %185 = vector.extract_strided_slice %168 {offsets = [0, 0], sizes = [8, 8], strides = [1, 1]} : vector<8x32xf32> to vector<8x8xf32>
    %cst_74 = arith.constant dense<0.000000e+00> : vector<8x8xf32>
    %186 = tpu.matmul %184, %185, %cst_74 {dimension_numbers = #tpu.dot_dimension_numbers<[1], [0], [0], [1], [0, 0, 1, 1], [], []>} : vector<8x8xf32>, vector<8x8xf32>, vector<8x8xf32> -> vector<8x8xf32>
    %187 = vector.extract_strided_slice %169 {offsets = [0, 0], sizes = [8, 32], strides = [1, 1]} : vector<32x32xf32> to vector<8x32xf32>
    %cst_75 = arith.constant dense<0.000000e+00> : vector<8x32xf32>
    %188 = tpu.matmul %186, %187, %cst_75 {dimension_numbers = #tpu.dot_dimension_numbers<[1], [0], [0], [1], [0, 0, 1, 1], [], []>} : vector<8x8xf32>, vector<8x32xf32>, vector<8x32xf32> -> vector<8x32xf32>
    %189 = arith.addf %170, %188 : vector<8x32xf32>
    %190 = vector.extract_strided_slice %161 {offsets = [0, 8], sizes = [8, 8], strides = [1, 1]} : vector<8x32xf32> to vector<8x8xf32>
    %191 = vector.extract_strided_slice %167 {offsets = [0, 8], sizes = [8, 8], strides = [1, 1]} : vector<8x32xf32> to vector<8x8xf32>
    %192 = tpu.transpose %191, [1, 0] : vector<8x8xf32> -> vector<8x8xf32>
    %cst_76 = arith.constant dense<0.000000e+00> : vector<8x8xf32>
    %193 = tpu.matmul %190, %192, %cst_76 {dimension_numbers = #tpu.dot_dimension_numbers<[1], [0], [0], [1], [0, 0, 1, 1], [], []>} : vector<8x8xf32>, vector<8x8xf32>, vector<8x8xf32> -> vector<8x8xf32>
    %cst_77 = arith.constant dense<0xFF800000> : vector<8xf32>
    %194 = vector.multi_reduction <maximumf>, %193, %cst_77 [1] : vector<8x8xf32> to vector<8xf32>
    %195 = vector.shape_cast %194 : vector<8xf32> to vector<8x1xf32>
    %196 = vector.broadcast %195 : vector<8x1xf32> to vector<8x8xf32>
    %197 = arith.subf %193, %196 : vector<8x8xf32>
    %198 = math.exp %197 : vector<8x8xf32>
    %cst_78 = arith.constant dense<0.000000e+00> : vector<8xf32>
    %199 = vector.multi_reduction <add>, %198, %cst_78 [1] : vector<8x8xf32> to vector<8xf32>
    %200 = vector.shape_cast %199 : vector<8xf32> to vector<8x1xf32>
    %201 = tpu.reciprocal %200 {approx = true} : vector<8x1xf32> -> vector<8x1xf32>
    %202 = vector.broadcast %201 : vector<8x1xf32> to vector<8x8xf32>
    %203 = arith.mulf %198, %202 : vector<8x8xf32>
    %204 = vector.extract_strided_slice %168 {offsets = [0, 8], sizes = [8, 8], strides = [1, 1]} : vector<8x32xf32> to vector<8x8xf32>
    %cst_79 = arith.constant dense<0.000000e+00> : vector<8x8xf32>
    %205 = tpu.matmul %203, %204, %cst_79 {dimension_numbers = #tpu.dot_dimension_numbers<[1], [0], [0], [1], [0, 0, 1, 1], [], []>} : vector<8x8xf32>, vector<8x8xf32>, vector<8x8xf32> -> vector<8x8xf32>
    %206 = vector.extract_strided_slice %169 {offsets = [8, 0], sizes = [8, 32], strides = [1, 1]} : vector<32x32xf32> to vector<8x32xf32>
    %cst_80 = arith.constant dense<0.000000e+00> : vector<8x32xf32>
    %207 = tpu.matmul %205, %206, %cst_80 {dimension_numbers = #tpu.dot_dimension_numbers<[1], [0], [0], [1], [0, 0, 1, 1], [], []>} : vector<8x8xf32>, vector<8x32xf32>, vector<8x32xf32> -> vector<8x32xf32>
    %208 = arith.addf %189, %207 : vector<8x32xf32>
    %209 = vector.extract_strided_slice %161 {offsets = [0, 16], sizes = [8, 8], strides = [1, 1]} : vector<8x32xf32> to vector<8x8xf32>
    %210 = vector.extract_strided_slice %167 {offsets = [0, 16], sizes = [8, 8], strides = [1, 1]} : vector<8x32xf32> to vector<8x8xf32>
    %211 = tpu.transpose %210, [1, 0] : vector<8x8xf32> -> vector<8x8xf32>
    %cst_81 = arith.constant dense<0.000000e+00> : vector<8x8xf32>
    %212 = tpu.matmul %209, %211, %cst_81 {dimension_numbers = #tpu.dot_dimension_numbers<[1], [0], [0], [1], [0, 0, 1, 1], [], []>} : vector<8x8xf32>, vector<8x8xf32>, vector<8x8xf32> -> vector<8x8xf32>
    %cst_82 = arith.constant dense<0xFF800000> : vector<8xf32>
    %213 = vector.multi_reduction <maximumf>, %212, %cst_82 [1] : vector<8x8xf32> to vector<8xf32>
    %214 = vector.shape_cast %213 : vector<8xf32> to vector<8x1xf32>
    %215 = vector.broadcast %214 : vector<8x1xf32> to vector<8x8xf32>
    %216 = arith.subf %212, %215 : vector<8x8xf32>
    %217 = math.exp %216 : vector<8x8xf32>
    %cst_83 = arith.constant dense<0.000000e+00> : vector<8xf32>
    %218 = vector.multi_reduction <add>, %217, %cst_83 [1] : vector<8x8xf32> to vector<8xf32>
    %219 = vector.shape_cast %218 : vector<8xf32> to vector<8x1xf32>
    %220 = tpu.reciprocal %219 {approx = true} : vector<8x1xf32> -> vector<8x1xf32>
    %221 = vector.broadcast %220 : vector<8x1xf32> to vector<8x8xf32>
    %222 = arith.mulf %217, %221 : vector<8x8xf32>
    %223 = vector.extract_strided_slice %168 {offsets = [0, 16], sizes = [8, 8], strides = [1, 1]} : vector<8x32xf32> to vector<8x8xf32>
    %cst_84 = arith.constant dense<0.000000e+00> : vector<8x8xf32>
    %224 = tpu.matmul %222, %223, %cst_84 {dimension_numbers = #tpu.dot_dimension_numbers<[1], [0], [0], [1], [0, 0, 1, 1], [], []>} : vector<8x8xf32>, vector<8x8xf32>, vector<8x8xf32> -> vector<8x8xf32>
    %225 = vector.extract_strided_slice %169 {offsets = [16, 0], sizes = [8, 32], strides = [1, 1]} : vector<32x32xf32> to vector<8x32xf32>
    %cst_85 = arith.constant dense<0.000000e+00> : vector<8x32xf32>
    %226 = tpu.matmul %224, %225, %cst_85 {dimension_numbers = #tpu.dot_dimension_numbers<[1], [0], [0], [1], [0, 0, 1, 1], [], []>} : vector<8x8xf32>, vector<8x32xf32>, vector<8x32xf32> -> vector<8x32xf32>
    %227 = arith.addf %208, %226 : vector<8x32xf32>
    %228 = vector.extract_strided_slice %161 {offsets = [0, 24], sizes = [8, 8], strides = [1, 1]} : vector<8x32xf32> to vector<8x8xf32>
    %229 = vector.extract_strided_slice %167 {offsets = [0, 24], sizes = [8, 8], strides = [1, 1]} : vector<8x32xf32> to vector<8x8xf32>
    %230 = tpu.transpose %229, [1, 0] : vector<8x8xf32> -> vector<8x8xf32>
    %cst_86 = arith.constant dense<0.000000e+00> : vector<8x8xf32>
    %231 = tpu.matmul %228, %230, %cst_86 {dimension_numbers = #tpu.dot_dimension_numbers<[1], [0], [0], [1], [0, 0, 1, 1], [], []>} : vector<8x8xf32>, vector<8x8xf32>, vector<8x8xf32> -> vector<8x8xf32>
    %cst_87 = arith.constant dense<0xFF800000> : vector<8xf32>
    %232 = vector.multi_reduction <maximumf>, %231, %cst_87 [1] : vector<8x8xf32> to vector<8xf32>
    %233 = vector.shape_cast %232 : vector<8xf32> to vector<8x1xf32>
    %234 = vector.broadcast %233 : vector<8x1xf32> to vector<8x8xf32>
    %235 = arith.subf %231, %234 : vector<8x8xf32>
    %236 = math.exp %235 : vector<8x8xf32>
    %cst_88 = arith.constant dense<0.000000e+00> : vector<8xf32>
    %237 = vector.multi_reduction <add>, %236, %cst_88 [1] : vector<8x8xf32> to vector<8xf32>
    %238 = vector.shape_cast %237 : vector<8xf32> to vector<8x1xf32>
    %239 = tpu.reciprocal %238 {approx = true} : vector<8x1xf32> -> vector<8x1xf32>
    %240 = vector.broadcast %239 : vector<8x1xf32> to vector<8x8xf32>
    %241 = arith.mulf %236, %240 : vector<8x8xf32>
    %242 = vector.extract_strided_slice %168 {offsets = [0, 24], sizes = [8, 8], strides = [1, 1]} : vector<8x32xf32> to vector<8x8xf32>
    %cst_89 = arith.constant dense<0.000000e+00> : vector<8x8xf32>
    %243 = tpu.matmul %241, %242, %cst_89 {dimension_numbers = #tpu.dot_dimension_numbers<[1], [0], [0], [1], [0, 0, 1, 1], [], []>} : vector<8x8xf32>, vector<8x8xf32>, vector<8x8xf32> -> vector<8x8xf32>
    %244 = vector.extract_strided_slice %169 {offsets = [24, 0], sizes = [8, 32], strides = [1, 1]} : vector<32x32xf32> to vector<8x32xf32>
    %cst_90 = arith.constant dense<0.000000e+00> : vector<8x32xf32>
    %245 = tpu.matmul %243, %244, %cst_90 {dimension_numbers = #tpu.dot_dimension_numbers<[1], [0], [0], [1], [0, 0, 1, 1], [], []>} : vector<8x8xf32>, vector<8x32xf32>, vector<8x32xf32> -> vector<8x32xf32>
    %246 = arith.addf %227, %245 : vector<8x32xf32>
    %c0_91 = arith.constant 0 : index
    %c0_92 = arith.constant 0 : index
    %247 = vector.load %arg16[%c0_91, %c0_92] : memref<1x32xf32, #tpu.memory_space<vmem>>, vector<1x32xf32>
    %248 = vector.broadcast %247 : vector<1x32xf32> to vector<8x32xf32>
    %249 = arith.addf %246, %248 : vector<8x32xf32>
    %250 = arith.addf %130, %249 : vector<8x32xf32>
    %c0_93 = arith.constant 0 : index
    %c0_94 = arith.constant 0 : index
    %251 = vector.load %arg17[%c0_93, %c0_94] : memref<1x32xf32, #tpu.memory_space<vmem>>, vector<1x32xf32>
    %c0_95 = arith.constant 0 : index
    %c0_96 = arith.constant 0 : index
    %252 = vector.load %arg18[%c0_95, %c0_96] : memref<1x32xf32, #tpu.memory_space<vmem>>, vector<1x32xf32>
    %cst_97 = arith.constant dense<0.000000e+00> : vector<8xf32>
    %253 = vector.multi_reduction <add>, %250, %cst_97 [1] : vector<8x32xf32> to vector<8xf32>
    %254 = vector.shape_cast %253 : vector<8xf32> to vector<8x1xf32>
    %cst_98 = arith.constant 3.200000e+01 : f32
    %255 = vector.broadcast %cst_98 : f32 to vector<8x1xf32>
    %256 = arith.divf %254, %255 : vector<8x1xf32>
    %257 = vector.broadcast %256 : vector<8x1xf32> to vector<8x32xf32>
    %258 = arith.subf %250, %257 : vector<8x32xf32>
    %259 = arith.mulf %258, %258 : vector<8x32xf32>
    %cst_99 = arith.constant dense<0.000000e+00> : vector<8xf32>
    %260 = vector.multi_reduction <add>, %259, %cst_99 [1] : vector<8x32xf32> to vector<8xf32>
    %261 = vector.shape_cast %260 : vector<8xf32> to vector<8x1xf32>
    %cst_100 = arith.constant 3.200000e+01 : f32
    %262 = vector.broadcast %cst_100 : f32 to vector<8x1xf32>
    %263 = arith.divf %261, %262 : vector<8x1xf32>
    %264 = vector.broadcast %256 : vector<8x1xf32> to vector<8x32xf32>
    %265 = arith.subf %250, %264 : vector<8x32xf32>
    %cst_101 = arith.constant 9.99999974E-6 : f32
    %266 = vector.broadcast %cst_101 : f32 to vector<8x1xf32>
    %267 = arith.addf %263, %266 : vector<8x1xf32>
    %268 = math.rsqrt %267 : vector<8x1xf32>
    %269 = vector.broadcast %268 : vector<8x1xf32> to vector<8x32xf32>
    %270 = arith.mulf %265, %269 : vector<8x32xf32>
    %271 = vector.broadcast %251 : vector<1x32xf32> to vector<8x32xf32>
    %272 = arith.mulf %270, %271 : vector<8x32xf32>
    %273 = vector.broadcast %252 : vector<1x32xf32> to vector<8x32xf32>
    %274 = arith.addf %272, %273 : vector<8x32xf32>
    %c0_102 = arith.constant 0 : index
    %c0_103 = arith.constant 0 : index
    %275 = vector.load %arg19[%c0_102, %c0_103] : memref<32x64xf32, #tpu.memory_space<vmem>>, vector<32x64xf32>
    %cst_104 = arith.constant dense<0.000000e+00> : vector<8x64xf32>
    %276 = tpu.matmul %274, %275, %cst_104 {dimension_numbers = #tpu.dot_dimension_numbers<[1], [0], [0], [1], [0, 0, 1, 1], [], []>} : vector<8x32xf32>, vector<32x64xf32>, vector<8x64xf32> -> vector<8x64xf32>
    %c0_105 = arith.constant 0 : index
    %c0_106 = arith.constant 0 : index
    %277 = vector.load %arg20[%c0_105, %c0_106] : memref<1x64xf32, #tpu.memory_space<vmem>>, vector<1x64xf32>
    %278 = vector.broadcast %277 : vector<1x64xf32> to vector<8x64xf32>
    %279 = arith.addf %276, %278 : vector<8x64xf32>
    %cst_107 = arith.constant 0.000000e+00 : f32
    %280 = vector.broadcast %cst_107 : f32 to vector<8x64xf32>
    %281 = arith.maximumf %279, %280 : vector<8x64xf32>
    %c0_108 = arith.constant 0 : index
    %c0_109 = arith.constant 0 : index
    %282 = vector.load %arg21[%c0_108, %c0_109] : memref<64x32xf32, #tpu.memory_space<vmem>>, vector<64x32xf32>
    %cst_110 = arith.constant dense<0.000000e+00> : vector<8x32xf32>
    %283 = tpu.matmul %281, %282, %cst_110 {dimension_numbers = #tpu.dot_dimension_numbers<[1], [0], [0], [1], [0, 0, 1, 1], [], []>} : vector<8x64xf32>, vector<64x32xf32>, vector<8x32xf32> -> vector<8x32xf32>
    %c0_111 = arith.constant 0 : index
    %c0_112 = arith.constant 0 : index
    %284 = vector.load %arg22[%c0_111, %c0_112] : memref<1x32xf32, #tpu.memory_space<vmem>>, vector<1x32xf32>
    %285 = vector.broadcast %284 : vector<1x32xf32> to vector<8x32xf32>
    %286 = arith.addf %283, %285 : vector<8x32xf32>
    %287 = arith.addf %250, %286 : vector<8x32xf32>
    %c0_113 = arith.constant 0 : index
    %c0_114 = arith.constant 0 : index
    %c0_115 = arith.constant 0 : index
    %288 = vector.load %arg23[%c0_113, %c0_114, %c0_115] : memref<1x8x32xf32, #tpu.memory_space<vmem>>, vector<1x8x32xf32>
    %289 = vector.shape_cast %288 : vector<1x8x32xf32> to vector<8x32xf32>
    %290 = vector.shape_cast %287 : vector<8x32xf32> to vector<1x8x32xf32>
    tpu.vector_store %arg23[%c0_113, %c0_114, %c0_115], %290 {strides = array<i32>} : memref<1x8x32xf32, #tpu.memory_space<vmem>>, vector<1x8x32xf32>,
    return
  }
  func.func @transform_0(%arg0: i32) -> (i32, i32, i32) {
    %c0_i32 = arith.constant 0 : i32
    %c0_i32_0 = arith.constant 0 : i32
    %c0_i32_1 = arith.constant 0 : i32
    return %arg0, %c0_i32, %c0_i32_0 : i32, i32, i32
  }
  func.func @transform_1(%arg0: i32) -> (i32, i32, i32) {
    %c0_i32 = arith.constant 0 : i32
    %c0_i32_0 = arith.constant 0 : i32
    %c0_i32_1 = arith.constant 0 : i32
    return %arg0, %c0_i32, %c0_i32_0 : i32, i32, i32
  }
  func.func @transform_2(%arg0: i32) -> (i32, i32) {
    %c0_i32 = arith.constant 0 : i32
    %c0_i32_0 = arith.constant 0 : i32
    %c0_i32_1 = arith.constant 0 : i32
    return %c0_i32, %c0_i32_0 : i32, i32
  }
  func.func @transform_3(%arg0: i32) -> (i32, i32) {
    %c0_i32 = arith.constant 0 : i32
    %c0_i32_0 = arith.constant 0 : i32
    %c0_i32_1 = arith.constant 0 : i32
    return %c0_i32, %c0_i32_0 : i32, i32
  }
  func.func @transform_4(%arg0: i32) -> (i32, i32) {
    %c0_i32 = arith.constant 0 : i32
    %c0_i32_0 = arith.constant 0 : i32
    %c0_i32_1 = arith.constant 0 : i32
    return %c0_i32, %c0_i32_0 : i32, i32
  }
  func.func @transform_5(%arg0: i32) -> (i32, i32) {
    %c0_i32 = arith.constant 0 : i32
    %c0_i32_0 = arith.constant 0 : i32
    %c0_i32_1 = arith.constant 0 : i32
    return %c0_i32, %c0_i32_0 : i32, i32
  }
  func.func @transform_6(%arg0: i32) -> (i32, i32) {
    %c0_i32 = arith.constant 0 : i32
    %c0_i32_0 = arith.constant 0 : i32
    %c0_i32_1 = arith.constant 0 : i32
    return %c0_i32, %c0_i32_0 : i32, i32
  }
  func.func @transform_7(%arg0: i32) -> (i32, i32) {
    %c0_i32 = arith.constant 0 : i32
    %c0_i32_0 = arith.constant 0 : i32
    %c0_i32_1 = arith.constant 0 : i32
    return %c0_i32, %c0_i32_0 : i32, i32
  }
  func.func @transform_8(%arg0: i32) -> (i32, i32) {
    %c0_i32 = arith.constant 0 : i32
    %c0_i32_0 = arith.constant 0 : i32
    %c0_i32_1 = arith.constant 0 : i32
    return %c0_i32, %c0_i32_0 : i32, i32
  }
  func.func @transform_9(%arg0: i32) -> (i32, i32) {
    %c0_i32 = arith.constant 0 : i32
    %c0_i32_0 = arith.constant 0 : i32
    %c0_i32_1 = arith.constant 0 : i32
    return %c0_i32, %c0_i32_0 : i32, i32
  }
  func.func @transform_10(%arg0: i32) -> (i32, i32) {
    %c0_i32 = arith.constant 0 : i32
    %c0_i32_0 = arith.constant 0 : i32
    %c0_i32_1 = arith.constant 0 : i32
    return %c0_i32, %c0_i32_0 : i32, i32
  }
  func.func @transform_11(%arg0: i32) -> (i32, i32) {
    %c0_i32 = arith.constant 0 : i32
    %c0_i32_0 = arith.constant 0 : i32
    %c0_i32_1 = arith.constant 0 : i32
    return %c0_i32, %c0_i32_0 : i32, i32
  }
  func.func @transform_12(%arg0: i32) -> (i32, i32) {
    %c0_i32 = arith.constant 0 : i32
    %c0_i32_0 = arith.constant 0 : i32
    %c0_i32_1 = arith.constant 0 : i32
    return %c0_i32, %c0_i32_0 : i32, i32
  }
  func.func @transform_13(%arg0: i32) -> (i32, i32) {
    %c0_i32 = arith.constant 0 : i32
    %c0_i32_0 = arith.constant 0 : i32
    %c0_i32_1 = arith.constant 0 : i32
    return %c0_i32, %c0_i32_0 : i32, i32
  }
  func.func @transform_14(%arg0: i32) -> (i32, i32) {
    %c0_i32 = arith.constant 0 : i32
    %c0_i32_0 = arith.constant 0 : i32
    %c0_i32_1 = arith.constant 0 : i32
    return %c0_i32, %c0_i32_0 : i32, i32
  }
  func.func @transform_15(%arg0: i32) -> (i32, i32) {
    %c0_i32 = arith.constant 0 : i32
    %c0_i32_0 = arith.constant 0 : i32
    %c0_i32_1 = arith.constant 0 : i32
    return %c0_i32, %c0_i32_0 : i32, i32
  }
  func.func @transform_16(%arg0: i32) -> (i32, i32) {
    %c0_i32 = arith.constant 0 : i32
    %c0_i32_0 = arith.constant 0 : i32
    %c0_i32_1 = arith.constant 0 : i32
    return %c0_i32, %c0_i32_0 : i32, i32
  }
  func.func @transform_17(%arg0: i32) -> (i32, i32) {
    %c0_i32 = arith.constant 0 : i32
    %c0_i32_0 = arith.constant 0 : i32
    %c0_i32_1 = arith.constant 0 : i32
    return %c0_i32, %c0_i32_0 : i32, i32
  }
  func.func @transform_18(%arg0: i32) -> (i32, i32) {
    %c0_i32 = arith.constant 0 : i32
    %c0_i32_0 = arith.constant 0 : i32
    %c0_i32_1 = arith.constant 0 : i32
    return %c0_i32, %c0_i32_0 : i32, i32
  }
  func.func @transform_19(%arg0: i32) -> (i32, i32) {
    %c0_i32 = arith.constant 0 : i32
    %c0_i32_0 = arith.constant 0 : i32
    %c0_i32_1 = arith.constant 0 : i32
    return %c0_i32, %c0_i32_0 : i32, i32
  }
  func.func @transform_20(%arg0: i32) -> (i32, i32) {
    %c0_i32 = arith.constant 0 : i32
    %c0_i32_0 = arith.constant 0 : i32
    %c0_i32_1 = arith.constant 0 : i32
    return %c0_i32, %c0_i32_0 : i32, i32
  }
  func.func @transform_21(%arg0: i32) -> (i32, i32) {
    %c0_i32 = arith.constant 0 : i32
    %c0_i32_0 = arith.constant 0 : i32
    %c0_i32_1 = arith.constant 0 : i32
    return %c0_i32, %c0_i32_0 : i32, i32
  }
  func.func @transform_22(%arg0: i32) -> (i32, i32, i32) {
    %c0_i32 = arith.constant 0 : i32
    %c0_i32_0 = arith.constant 0 : i32
    %c0_i32_1 = arith.constant 0 : i32
    return %arg0, %c0_i32, %c0_i32_0 : i32, i32, i32
  }
}

</mosaic_0001>

<bundles_post_ra>
// kernel: decoder_layer.1
= control target key start
LH: loop header
LB: loop body
LE: loop exit
PB: predicated region body
PF: predicated region fallthrough
CT: control target
= control target key end

     0   :  { %s5319_s0 = inlined_call_operand.hbm [shape: f32[2,8,32], index: 0, kind: input, shape index: {}]   ;;  %s5320_s1 = inlined_call_operand.hbm [shape: f32[2,8,32], index: 1, kind: input, shape index: {}]   ;;  %s5321_s2 = inlined_call_operand.vmem [shape: f32[1,32], index: 2, kind: input, shape index: {}]   ;;  %s5322_s3 = inlined_call_operand.vmem [shape: f32[1,32], index: 3, kind: input, shape index: {}]   ;;  %s5323_s4 = inlined_call_operand.vmem [shape: f32[32,96], index: 4, kind: input, shape index: {}]   ;;  %s5324_s5 = inlined_call_operand.hbm [shape: f32[1,96], index: 5, kind: input, shape index: {}]   ;;  %s5325_s6 = inlined_call_operand.vmem [shape: f32[32,32], index: 6, kind: input, shape index: {}]   ;;  %s5326_s7 = inlined_call_operand.hbm [shape: f32[1,32], index: 7, kind: input, shape index: {}]   ;;  %s5327_s8 = inlined_call_operand.vmem [shape: f32[1,32], index: 8, kind: input, shape index: {}]   ;;  %s5328_s9 = inlined_call_operand.vmem [shape: f32[1,32], index: 9, kind: input, shape index: {}]   ;;  %s5329_s10 = inlined_call_operand.vmem [shape: f32[32,32], index: 10, kind: input, shape index: {}]   ;;  %s5330_s11 = inlined_call_operand.hbm [shape: f32[1,32], index: 11, kind: input, shape index: {}]   ;;  %s5331_s12 = inlined_call_operand.vmem [shape: f32[32,64], index: 12, kind: input, shape index: {}]   ;;  %s5332_s13 = inlined_call_operand.hbm [shape: f32[1,64], index: 13, kind: input, shape index: {}]   ;;  %s5333_s14 = inlined_call_operand.hbm [shape: f32[32,32], index: 14, kind: input, shape index: {}]   ;;  %s5334_s15 = inlined_call_operand.hbm [shape: f32[1,32], index: 15, kind: input, shape index: {}]   ;;  %s5335_s16 = inlined_call_operand.vmem [shape: f32[1,32], index: 16, kind: input, shape index: {}]   ;;  %s5336_s17 = inlined_call_operand.vmem [shape: f32[1,32], index: 17, kind: input, shape index: {}]   ;;  %s5337_s18 = inlined_call_operand.vmem [shape: f32[32,64], index: 18, kind: input, shape index: {}]   ;;  %s5338_s19 = inlined_call_operand.hbm [shape: f32[1,64], index: 19, kind: input, shape index: {}]   ;;  %s5339_s20 = inlined_call_operand.vmem [shape: f32[64,32], index: 20, kind: input, shape index: {}]   ;;  %s5340_s21 = inlined_call_operand.hbm [shape: f32[1,32], index: 21, kind: input, shape index: {}]   ;;  %s5341_s22 = inlined_call_operand.hbm [shape: f32[2,8,32], index: 22, kind: output, shape index: {}]  }
   0x1   :  { %5358 = sst [smem:[#allocation28_spill]] %s5319_s0 }
   0x2   :  { %5359 = sst [smem:[#allocation29_spill]] %s5320_s1 }
   0x3   :  { %5360 = sst [smem:[#allocation30_spill]] %s5321_s2 }
   0x4   :  { %5361 = sst [smem:[#allocation31_spill]] %s5322_s3 }
   0x5   :  { %5362 = sst [smem:[#allocation32_spill]] %s5323_s4 }
   0x6   :  { %5363 = sst [smem:[#allocation33_spill]] %s5324_s5 }
   0x7   :  { %5364 = sst [smem:[#allocation34_spill]] %s5325_s6 }
   0x8   :  { %5365 = sst [smem:[#allocation35_spill]] %s5326_s7 }
   0x9   :  { %5366 = sst [smem:[#allocation36_spill]] %s5327_s8 }
   0xa   :  { %5367 = sst [smem:[#allocation37_spill]] %s5328_s9 }
   0xb   :  { %5368 = sst [smem:[#allocation38_spill]] %s5330_s11 }
   0xc   :  { %5369 = sst [smem:[#allocation39_spill]] %s5332_s13 }
   0xd   :  { %5370 = sst [smem:[#allocation40_spill]] %s5333_s14 }
   0xe   :  { %5371 = sst [smem:[#allocation41_spill]] %s5334_s15 }
   0xf   :  { %5372 = sst [smem:[#allocation42_spill]] %s5335_s16 }
  0x10   :  { %5373 = sst [smem:[#allocation43_spill]] %s5336_s17 }
  0x11   :  { %5374 = sst [smem:[#allocation44_spill]] %s5337_s18 }
  0x12   :  { %5375 = sst [smem:[#allocation45_spill]] %s5338_s19 }
  0x13   :  { %5376 = sst [smem:[#allocation46_spill]] %s5339_s20 }
  0x14   :  { %5377 = sst [smem:[#allocation47_spill]] %s5340_s21 }
  0x15   :  { %5378 = sst [smem:[#allocation48_spill]] %s5341_s22 }
  0x16   :  { %27 = vsyncpa [#allocation3], 0 }
  0x17   :  { %29 = vsyncpa [#allocation3 + $0x1], 0 }
  0x18   :  { %30 = vsyncpa [#allocation6], 0 }
  0x19   :  { %32 = vsyncpa [#allocation6 + $0x1], 0 }
  0x1a   :  { %33 = vsyncpa [#allocation9], 0 }
  0x1b   :  { %34 = vsyncpa [#allocation12], 0 }
  0x1c   :  { %35 = vsyncpa [#allocation15], 0 }
  0x1d   :  { %36 = vsyncpa [#allocation18], 0 }
  0x1e   :  { %37 = vsyncpa [#allocation4], 0 }
  0x1f   :  { %39 = vsyncpa [#allocation4 + $0x1], 0  ;;  %s4565_s3 = smov 0   ;;  %s4567_s28 = smov 0  }
  0x20   :  { %s4569_s29 = smov 0   ;;  %s4571_s30 = smov 0  }
  0x21 LB: > { %s4423_s4 = smov [#allocation7]   ;;  %s4586_s23 = sadd.s32 4294967295, %s4421_s30   ;;  %s4421_s30 = sphi %s4571_s30, %s5429_s30   ;;  %s4417_s29 = sphi %s4569_s29, %s5428_s29   ;;  %s4413_s28 = sphi %s4567_s28, %s5427_s28   ;;  %s4409_s3 = sphi %s4565_s3, %s5426_s3  }
  0x22   : > { %s570_s0 = sshll.u32 %s4423_s4, 4  ;;  %p3485_p0 = scmp.ge.s32.totalorder %s4421_s30, 1  ;;  %s4591_s0 = int_to_ptr.vmem [resolvable:$true] %s570_s0 }
  0x23   : > { %p5350_p1 = scmp.eq.s32.totalorder %s4586_s23, 0  ;;  %p548_p2 = scmp.lt.s32.totalorder %s4421_s30, 3 }
  0x24   : > { %s4424_s5 = smov [#allocation8]   ;;  %s4425_s6 = smov [#allocation11]  }
  0x25   : > { %p4593_p3 = pnand %p3485_p0, %p548_p2  ;;  %s584_s24 = sshll.u32 %s4424_s5, 4  ;;  %s4600_s24 = int_to_ptr.vmem [resolvable:$true] %s584_s24 }
  0x26   : > { %s618_s25 = sshll.u32 %s4425_s6, 4  ;;  %s4426_s2 = smov [#allocation14]   ;;  %s4608_s25 = int_to_ptr.vmem [resolvable:$true] %s618_s25 }
  0x27   : > { %s5379_s1 = scalar_select %p4593_p3, 1, 0 }
  0x28   : > { %p3899_p5 = pneg %p4593_p3  ;;  %s4610_s27 = sshll.u32 %s4426_s2, 4  ;;  %s643_s27 = int_to_ptr.vmem [resolvable:$true] %s4610_s27 }
  0x29   : > { %s5381_s17 = sld [smem:[#allocation33_spill]] }
  0x2a   : > { %p4604_p6 = pnand %p3899_p5, %p5350_p1 }
  0x2c   : > { %p4620_p8 = pneg %p4604_p6 }
  0x2f   : > { %s4047_s16 = scalar_lea.hbm %s5381_s17, 16 }
  0x30   : > { %p4048_p7 = scmp.ne.s32.totalorder %s5381_s17, %s4047_s16  ;;  %p4054_p11 = scmp.lt.u32.totalorder %s4047_s16, %s5381_s17 }
  0x32   : > { %p4050_p9 = pnand %p4620_p8, %p4048_p7 }
  0x34   : > { %p4051_p10 = pneg %p4050_p9 }
  0x36   : > { %p4056_p12 = pnand %p4054_p11, %p4051_p10 }
  0x38   : > { %4059 = shalt.err (!%p4056_p12)
}
  0x39   : > { %s4060_s20 = scalar_lea.vmem %s4591_s0, 16  ;;  %s4067_s22 = scalar_lea.vmem %s4591_s0, 32 }
  0x3a   : > { %p4061_p13 = scmp.ne.s32.totalorder %s4591_s0, %s4060_s20  ;;  %p4068_p5 = scmp.lt.s32.totalorder %s4591_s0, %s4591_s0 }
  0x3b   : > { %p4069_p7 = scmp.lt.s32.totalorder %s4067_s22, %s4060_s20 }
  0x3c   : > { %p4063_p0 = pnand %p4061_p13, %p4620_p8 }
  0x3d   : > { %p4070_p9 = por %p4069_p7, %p4068_p5 }
  0x3e   : > { %p4064_p2 = pneg %p4063_p0 }
  0x40   : > { %p4071_p4 = pnand %p4070_p9, %p4064_p2 }
  0x42   : > { %4074 = shalt.err (!%p4071_p4)
}
  0x43   : > { %3902 = dma.hbm_to_vmem [thread:$0]  (!%p4604_p6), %s5381_s17, 16, %s4591_s0, [#allocation6]  }
  0x44   : > { %s5383_s7 = sld [smem:[#allocation35_spill]] }
  0x4a   : > { %s4075_s2 = scalar_lea.hbm %s5383_s7, 16 }
  0x4b   : > { %p4076_p10 = scmp.ne.s32.totalorder %s5383_s7, %s4075_s2  ;;  %p4082_p4 = scmp.lt.u32.totalorder %s4075_s2, %s5383_s7 }
  0x4d   : > { %p4078_p11 = pnand %p4076_p10, %p4620_p8 }
  0x4f   : > { %p4079_p12 = pneg %p4078_p11 }
  0x51   : > { %p4084_p13 = pnand %p4082_p4, %p4079_p12 }
  0x53   : > { %4087 = shalt.err (!%p4084_p13)
}
  0x54   : > { %s4088_s0 = scalar_lea.vmem %s4600_s24, 16  ;;  %s4095_s8 = scalar_lea.vmem %s4600_s24, 32 }
  0x55   : > { %p4089_p0 = scmp.ne.s32.totalorder %s4600_s24, %s4088_s0  ;;  %p4096_p7 = scmp.lt.s32.totalorder %s4600_s24, %s4600_s24 }
  0x56   : > { %p4097_p9 = scmp.lt.s32.totalorder %s4095_s8, %s4088_s0 }
  0x57   : > { %p4091_p2 = pnand %p4089_p0, %p4620_p8 }
  0x58   : > { %p4098_p10 = por %p4097_p9, %p4096_p7 }
  0x59   : > { %p4092_p5 = pneg %p4091_p2 }
  0x5b   : > { %p4099_p11 = pnand %p4098_p10, %p4092_p5 }
  0x5d   : > { %4102 = shalt.err (!%p4099_p11)
}
  0x5e   : > { %3905 = dma.hbm_to_vmem [thread:$0]  (!%p4604_p6), %s5383_s7, 16, %s4600_s24, [#allocation9]  }
  0x5f   : > { %s5384_s13 = sld [smem:[#allocation39_spill]] }
  0x65   : > { %s4103_s5 = scalar_lea.hbm %s5384_s13, 16 }
  0x66   : > { %p4104_p12 = scmp.ne.s32.totalorder %s5384_s13, %s4103_s5  ;;  %p4110_p0 = scmp.lt.u32.totalorder %s4103_s5, %s5384_s13 }
  0x68   : > { %p4106_p4 = pnand %p4104_p12, %p4620_p8 }
  0x6a   : > { %p4107_p13 = pneg %p4106_p4 }
  0x6c   : > { %p4112_p2 = pnand %p4110_p0, %p4107_p13 }
  0x6e   : > { %4115 = shalt.err (!%p4112_p2)
}
  0x6f   : > { %s4116_s24 = scalar_lea.vmem %s4608_s25, 16  ;;  %s4123_s8 = scalar_lea.vmem %s4608_s25, 32 }
  0x70   : > { %p4117_p5 = scmp.ne.s32.totalorder %s4608_s25, %s4116_s24  ;;  %p4124_p10 = scmp.lt.s32.totalorder %s4608_s25, %s4608_s25 }
  0x71   : > { %p4125_p11 = scmp.lt.s32.totalorder %s4123_s8, %s4116_s24 }
  0x72   : > { %p4119_p7 = pnand %p4117_p5, %p4620_p8 }
  0x73   : > { %p4126_p12 = por %p4125_p11, %p4124_p10 }
  0x74   : > { %p4120_p9 = pneg %p4119_p7 }
  0x76   : > { %p4127_p4 = pnand %p4126_p12, %p4120_p9 }
  0x78   : > { %4130 = shalt.err (!%p4127_p4)
}
  0x79   : > { %3911 = dma.hbm_to_vmem [thread:$0]  (!%p4604_p6), %s5384_s13, 16, %s4608_s25, [#allocation12]  }
  0x7a   : > { %s4427_s18 = smov [#allocation10]   ;;  %s5385_s15 = sld [smem:[#allocation41_spill]] }
  0x7b   : > { %s604_s4 = sshll.u32 %s4427_s18, 4  ;;  %s605_s4 = int_to_ptr.vmem [resolvable:$true] %s604_s4 }
  0x80   : > { %s4131_s20 = scalar_lea.hbm %s5385_s15, 16 }
  0x81   : > { %p4132_p13 = scmp.ne.s32.totalorder %s5385_s15, %s4131_s20  ;;  %p4138_p5 = scmp.lt.u32.totalorder %s4131_s20, %s5385_s15 }
  0x83   : > { %p4134_p0 = pnand %p4132_p13, %p4620_p8 }
  0x85   : > { %p4135_p2 = pneg %p4134_p0 }
  0x87   : > { %p4140_p7 = pnand %p4138_p5, %p4135_p2 }
  0x89   : > { %4143 = shalt.err (!%p4140_p7)
}
  0x8a   : > { %s4144_s25 = scalar_lea.vmem %s643_s27, 16  ;;  %s4151_s9 = scalar_lea.vmem %s643_s27, 32 }
  0x8b   : > { %p4145_p9 = scmp.ne.s32.totalorder %s643_s27, %s4144_s25  ;;  %p4152_p12 = scmp.lt.s32.totalorder %s643_s27, %s643_s27 }
  0x8c   : > { %p4153_p4 = scmp.lt.s32.totalorder %s4151_s9, %s4144_s25 }
  0x8d   : > { %p4147_p10 = pnand %p4145_p9, %p4620_p8 }
  0x8e   : > { %p4154_p1 = por %p4153_p4, %p4152_p12 }
  0x8f   : > { %p4148_p11 = pneg %p4147_p10 }
  0x91   : > { %p4155_p3 = pnand %p4154_p1, %p4148_p11 }
  0x93   : > { %4158 = shalt.err (!%p4155_p3)
}
  0x94   : > { %3917 = dma.hbm_to_vmem [thread:$0]  (!%p4604_p6), %s5385_s15, 16, %s643_s27, [#allocation15]  }
  0x95   : > { %s5386_s11 = sld [smem:[#allocation38_spill]] }
  0x9b   : > { %s4159_s20 = scalar_lea.hbm %s5386_s11, 16 }
  0x9c   : > { %p4160_p13 = scmp.ne.s32.totalorder %s5386_s11, %s4159_s20  ;;  %p4166_p3 = scmp.lt.u32.totalorder %s4159_s20, %s5386_s11 }
  0x9e   : > { %p4162_p0 = pnand %p4160_p13, %p4620_p8 }
  0xa0   : > { %p4163_p1 = pneg %p4162_p0 }
  0xa2   : > { %p4168_p2 = pnand %p4166_p3, %p4163_p1 }
  0xa4   : > { %4171 = shalt.err (!%p4168_p2)
}
  0xa5   : > { %s4172_s25 = scalar_lea.vmem %s605_s4, 16  ;;  %s4179_s27 = scalar_lea.vmem %s605_s4, 32 }
  0xa6   : > { %p4173_p5 = scmp.ne.s32.totalorder %s605_s4, %s4172_s25  ;;  %p4180_p10 = scmp.lt.s32.totalorder %s605_s4, %s605_s4 }
  0xa7   : > { %p4181_p11 = scmp.lt.s32.totalorder %s4179_s27, %s4172_s25 }
  0xa8   : > { %p4175_p7 = pnand %p4173_p5, %p4620_p8 }
  0xa9   : > { %p4182_p12 = por %p4181_p11, %p4180_p10 }
  0xaa   : > { %p4176_p9 = pneg %p4175_p7 }
  0xac   : > { %p4183_p4 = pnand %p4182_p12, %p4176_p9 }
  0xae   : > { %4186 = shalt.err (!%p4183_p4)
}
  0xaf   : > { %3908 = dma.hbm_to_vmem [thread:$0]  (!%p4604_p6), %s5386_s11, 16, %s605_s4, [#allocation9]  }
  0xb0   : > { %s4428_s18 = smov [#allocation13]   ;;  %s5387_s14 = sld [smem:[#allocation40_spill]] }
  0xb1   : > { %s628_s5 = sshll.u32 %s4428_s18, 4  ;;  %s629_s5 = int_to_ptr.vmem [resolvable:$true] %s628_s5 }
  0xb6   : > { %s4187_s22 = scalar_lea.hbm %s5387_s14, 512 }
  0xb7   : > { %p4188_p13 = scmp.ne.s32.totalorder %s5387_s14, %s4187_s22  ;;  %p4194_p3 = scmp.lt.u32.totalorder %s4187_s22, %s5387_s14 }
  0xb9   : > { %p4190_p0 = pnand %p4188_p13, %p4620_p8 }
  0xbb   : > { %p4191_p1 = pneg %p4190_p0 }
  0xbd   : > { %p4196_p2 = pnand %p4194_p3, %p4191_p1 }
  0xbf   : > { %4199 = shalt.err (!%p4196_p2)
}
  0xc0   : > { %s4200_s4 = scalar_lea.vmem %s629_s5, 512  ;;  %p4208_p10 = scmp.lt.s32.totalorder %s629_s5, %s629_s5 }
  0xc1   : > { %p4201_p5 = scmp.ne.s32.totalorder %s629_s5, %s4200_s4  ;;  %p4209_p11 = scmp.lt.s32.totalorder %s4200_s4, %s4200_s4 }
  0xc3   : > { %p4203_p7 = pnand %p4201_p5, %p4620_p8  ;;  %p4210_p12 = por %p4209_p11, %p4208_p10 }
  0xc5   : > { %p4204_p9 = pneg %p4203_p7 }
  0xc7   : > { %p4211_p4 = pnand %p4210_p12, %p4204_p9 }
  0xc9   : > { %4214 = shalt.err (!%p4211_p4)
}
  0xca   : > { %s4429_s27 = smov 128   ;;  %s4430_s9 = smov 8  }
  0xcb   : > { %3914 = dma.hbm_to_vmem [thread:$0]  (!%p4604_p6), %s5387_s14, 512, %s629_s5, [#allocation12], %s4429_s27, %s4429_s27, %s4430_s9  }
  0xcc   : > { %s4431_s2 = smov [#allocation16]   ;;  %s4432_s22 = smov [#allocation17]  }
  0xcd   : > { %s662_s20 = sshll.u32 %s4431_s2, 4  ;;  %s676_s0 = sshll.u32 %s4432_s22, 4  ;;  %s663_s20 = int_to_ptr.vmem [resolvable:$true] %s662_s20  ;;  %s4745_s0 = int_to_ptr.vmem [resolvable:$true] %s676_s0 }
  0xce   : > { %s5388_s19 = sld [smem:[#allocation45_spill]] }
  0xd4   : > { %s4215_s25 = scalar_lea.hbm %s5388_s19, 16 }
  0xd5   : > { %p4216_p13 = scmp.ne.s32.totalorder %s5388_s19, %s4215_s25  ;;  %p4222_p3 = scmp.lt.u32.totalorder %s4215_s25, %s5388_s19 }
  0xd7   : > { %p4218_p0 = pnand %p4216_p13, %p4620_p8 }
  0xd9   : > { %p4219_p1 = pneg %p4218_p0 }
  0xdb   : > { %p4224_p2 = pnand %p4222_p3, %p4219_p1 }
  0xdd   : > { %4227 = shalt.err (!%p4224_p2)
}
  0xde   : > { %s4228_s27 = scalar_lea.vmem %s663_s20, 16  ;;  %s4235_s9 = scalar_lea.vmem %s663_s20, 32 }
  0xdf   : > { %p4229_p5 = scmp.ne.s32.totalorder %s663_s20, %s4228_s27  ;;  %p4236_p10 = scmp.lt.s32.totalorder %s663_s20, %s663_s20 }
  0xe0   : > { %p4237_p11 = scmp.lt.s32.totalorder %s4235_s9, %s4228_s27 }
  0xe1   : > { %p4231_p7 = pnand %p4229_p5, %p4620_p8 }
  0xe2   : > { %p4238_p12 = por %p4237_p11, %p4236_p10 }
  0xe3   : > { %p4232_p9 = pneg %p4231_p7 }
  0xe5   : > { %p4239_p4 = pnand %p4238_p12, %p4232_p9 }
  0xe7   : > { %4242 = shalt.err (!%p4239_p4)
}
  0xe8   : > { %3920 = dma.hbm_to_vmem [thread:$0]  (!%p4604_p6), %s5388_s19, 16, %s663_s20, [#allocation15]  }
  0xe9   : > { %s5389_s21 = sld [smem:[#allocation47_spill]] }
  0xef   : > { %s4243_s24 = scalar_lea.hbm %s5389_s21, 16 }
  0xf0   : > { %p4244_p13 = scmp.ne.s32.totalorder %s5389_s21, %s4243_s24  ;;  %p4250_p3 = scmp.lt.u32.totalorder %s4243_s24, %s5389_s21 }
  0xf2   : > { %p4246_p0 = pnand %p4244_p13, %p4620_p8 }
  0xf4   : > { %p4247_p1 = pneg %p4246_p0 }
  0xf6   : > { %p4252_p2 = pnand %p4250_p3, %p4247_p1 }
  0xf8   : > { %4255 = shalt.err (!%p4252_p2)
}
  0xf9   : > { %s4256_s20 = scalar_lea.vmem %s4745_s0, 16  ;;  %s4263_s5 = scalar_lea.vmem %s4745_s0, 32 }
  0xfa   : > { %p4257_p5 = scmp.ne.s32.totalorder %s4745_s0, %s4256_s20  ;;  %p4264_p10 = scmp.lt.s32.totalorder %s4745_s0, %s4745_s0 }
  0xfb   : > { %p4265_p11 = scmp.lt.s32.totalorder %s4263_s5, %s4256_s20 }
  0xfc   : > { %p4259_p7 = pnand %p4257_p5, %p4620_p8 }
  0xfd   : > { %p4266_p12 = por %p4265_p11, %p4264_p10 }
  0xfe   : > { %p4260_p9 = pneg %p4259_p7 }
 0x100   : > { %p4267_p4 = pnand %p4266_p12, %p4260_p9 }
 0x102   : > { %4270 = shalt.err (!%p4267_p4)
}
 0x103   : > { %3923 = dma.hbm_to_vmem [thread:$0]  (!%p4604_p6), %s5389_s21, 16, %s4745_s0, [#allocation18]  }
 0x104   : > { %s3484_s26 = sadd.s32 4294967294, %s4421_s30   ;;  %s4791_s6 = sadd.s32 1, %s4421_s30  }
 0x105   : > { %s49_s7 = ssub.s32 %s4421_s30, %s4791_s6  ;;  %s52_s18 = sadd.s32 1, %s4417_s29 }
 0x106   : > { %p50_p8 = scmp.eq.s32.totalorder %s49_s7, 0  ;;  %p59_p13 = scmp.ne.s32.totalorder %s4417_s29, %s4413_s28 }
 0x107   : > { %p60_p0 = scmp.eq.s32.totalorder %s4421_s30, 0  ;;  %p65_p1 = scmp.ne.s32.totalorder %s4413_s28, %s4409_s3 }
 0x108   : > { %s4802_s2 = scalar_select %p50_p8, %s4417_s29, %s52_s18  }
 0x109   : > { %p4804_p3 = por %p60_p0, %p59_p13  ;;  %p5391_p2 = scmp.eq.s32.totalorder %s4586_s23, 0 }
 0x10a   : > { %p535_p5 = scmp.eq.s32.totalorder %s4586_s23, 1  ;;  %p541_p7 = scmp.eq.s32.totalorder %s3484_s26, 1 }
 0x10b   : > { %p4810_p6 = por %p5391_p2, %p65_p1  ;;  %p3943_p9 = scmp.lt.s32.totalorder %s4421_s30, 2 }
 0x10c   : > { %s687_s24 = sand.u32 1, %s4417_s29   ;;  %p4817_p10 = por %p535_p5, %p59_p13 }
 0x10d   : > { %s5392_s0 = scalar_select %p4810_p6, 1, 0 }
 0x10e   : > { %s5393_s8 = scalar_select %p4817_p10, 1, 0 }
 0x10f   : > { %p4821_p11 = por %p541_p7, %p65_p1  ;;  %s4825_s4 = sshll.u32 %s687_s24, 3 }
 0x110   : > { %s3496_s16 = sshll.u32 %s4421_s30, 7  ;;  %s5395_s27 = sld [smem:[#allocation28_spill]] }
 0x111   : > { %s5394_s25 = scalar_select %p4821_p11, 1, 0 }
 0x112   : > { %s691_s26 = scalar_lea.vmem [#allocation2], %s4825_s4  ;;  %p4838_p12 = pnand %p3943_p9, %p4804_p3 }
 0x113   : > { %s698_s7 = sshll.u32 %s691_s26, 4  ;;  %s5397_s14 = sld [smem:[#allocation29_spill]]  ;;  %s4834_s7 = int_to_ptr.vmem [resolvable:$true] %s698_s7 }
 0x114   : > { %s705_s5 = sand.u32 1, %s4421_s30   ;;  %s688_s15 = scalar_lea.sflag [#allocation3], %s687_s24 }
 0x115   : > { %p4273_p8 = pneg %p4838_p12 }
 0x116   : > { %s4831_s9 = scalar_lea.hbm %s5395_s27, %s3496_s16  ;;  %s4276_s19 = scalar_lea.hbm %s5395_s27, 256 }
 0x117   : > { %s4271_s17 = scalar_lea.hbm %s4831_s9, 128  ;;  %p4277_p1 = scmp.lt.u32.totalorder %s4831_s9, %s5395_s27 }
 0x118   : > { %p4272_p4 = scmp.ne.s32.totalorder %s4831_s9, %s4271_s17  ;;  %p4278_p3 = scmp.lt.u32.totalorder %s4276_s19, %s4271_s17 }
 0x119   : > { %s4845_s20 = scalar_lea.hbm %s5397_s14, %s3496_s16  ;;  %p4280_p5 = scmp.lt.u32.totalorder %s4271_s17, %s4831_s9 }
 0x11a   : > { %p4274_p13 = pnand %p4273_p8, %p4272_p4  ;;  %p4279_p2 = por %p4278_p3, %p4277_p1 }
 0x11c   : > { %p4275_p0 = pneg %p4274_p13  ;;  %p4281_p7 = por %p4280_p5, %p4279_p2 }
 0x11e   : > { %p4282_p9 = pnand %p4281_p7, %p4275_p0 }
 0x120   : > { %4285 = shalt.err (!%p4282_p9)
}
 0x121   : > { %s4286_s13 = scalar_lea.vmem %s4834_s7, 128  ;;  %s4433_s24 = smov [#allocation2]  }
 0x122   : > { %p4287_p4 = scmp.ne.s32.totalorder %s4834_s7, %s4286_s13  ;;  %s4291_s16 = sshll.u32 %s4433_s24, 4  ;;  %s4292_s16 = int_to_ptr.vmem [resolvable:$false] %s4291_s16 }
 0x123   : > { %s4293_s21 = scalar_lea.vmem %s4292_s16, 256  ;;  %p4294_p10 = scmp.lt.s32.totalorder %s4834_s7, %s4292_s16 }
 0x124   : > { %p4289_p13 = pnand %p4287_p4, %p4273_p8  ;;  %p4295_p1 = scmp.lt.s32.totalorder %s4293_s21, %s4286_s13 }
 0x126   : > { %p4290_p11 = pneg %p4289_p13  ;;  %p4296_p3 = por %p4295_p1, %p4294_p10 }
 0x128   : > { %p4297_p2 = pnand %p4296_p3, %p4290_p11 }
 0x12a   : > { %4300 = shalt.err (!%p4297_p2)
}
 0x12b   : > { %3927 = dma.hbm_to_vmem [thread:$0]  (!%p4838_p12), %s4831_s9, 128, %s4834_s7, %s688_s15  }
 0x12c   : > { %s709_s17 = scalar_lea.vmem [#allocation5], %s4825_s4  ;;  %s706_s22 = scalar_lea.sflag [#allocation6], %s705_s5 }
 0x12d   : > { %s716_s19 = sshll.u32 %s709_s17, 4  ;;  %s4301_s26 = scalar_lea.hbm %s4845_s20, 128  ;;  %s717_s19 = int_to_ptr.vmem [resolvable:$true] %s716_s19 }
 0x12e   : > { %p4302_p10 = scmp.ne.s32.totalorder %s4845_s20, %s4301_s26  ;;  %s4306_s24 = scalar_lea.hbm %s5397_s14, 256 }
 0x12f   : > { %p4307_p5 = scmp.lt.u32.totalorder %s4845_s20, %s5397_s14  ;;  %p4308_p7 = scmp.lt.u32.totalorder %s4306_s24, %s4301_s26 }
 0x130   : > { %p4304_p11 = pnand %p4302_p10, %p4273_p8  ;;  %p4310_p4 = scmp.lt.u32.totalorder %s4301_s26, %s4845_s20 }
 0x131   : > { %p4309_p9 = por %p4308_p7, %p4307_p5 }
 0x132   : > { %p4305_p0 = pneg %p4304_p11 }
 0x133   : > { %p4311_p13 = por %p4310_p4, %p4309_p9 }
 0x135   : > { %p4312_p1 = pnand %p4311_p13, %p4305_p0 }
 0x137   : > { %4315 = shalt.err (!%p4312_p1)
}
 0x138   : > { %s4316_s15 = scalar_lea.vmem %s717_s19, 128  ;;  %s4434_s4 = smov [#allocation5]  }
 0x139   : > { %p4317_p3 = scmp.ne.s32.totalorder %s717_s19, %s4316_s15  ;;  %s4321_s9 = sshll.u32 %s4434_s4, 4  ;;  %s4322_s9 = int_to_ptr.vmem [resolvable:$false] %s4321_s9 }
 0x13a   : > { %s4323_s7 = scalar_lea.vmem %s4322_s9, 256  ;;  %p4324_p11 = scmp.lt.s32.totalorder %s717_s19, %s4322_s9 }
 0x13b   : > { %p4319_p2 = pnand %p4317_p3, %p4273_p8  ;;  %p4325_p6 = scmp.lt.s32.totalorder %s4323_s7, %s4316_s15 }
 0x13d   : > { %p4320_p10 = pneg %p4319_p2  ;;  %p4326_p5 = por %p4325_p6, %p4324_p11 }
 0x13f   : > { %p4327_p7 = pnand %p4326_p5, %p4320_p10 }
 0x141   : > { %4330 = shalt.err (!%p4327_p7)
}
 0x142   : > { %3930 = dma.hbm_to_vmem [thread:$0]  (!%p4838_p12), %s4845_s20, 128, %s717_s19, %s706_s22  }
 0x143   : > { %p5398_p0 = scmp.ne.s32.totalorder %s5379_s1, 0 }
 0x144   : > { %s4898_s5 = sand.u32 (!%p5398_p0), 1, %s4413_s28   ;;  %p5399_p6 = scmp.ne.s32.totalorder (!%p5398_p0), %s5392_s0, 0 }
 0x145   : > { %725 = sbr.rel (%p5398_p0) target bundleno = 6864 (0x1ad0), region = 108  ;;  %s4901_s17 = sshll.u32 (!%p5398_p0), %s4898_s5, 3 }
 0x146   : > { %s728_s26 = scalar_lea.sflag (!%p5398_p0), [#allocation3], %s4898_s5  ;;  %s731_s11 = scalar_lea.vmem (!%p5398_p0), [#allocation2], %s4901_s17 }
 0x14c   : > { %4376 = dma.done.wait (%p5399_p6), %s728_s26, 128  }
 0x14d   : > { %4378 = vsyncadd (%p5399_p6), %s728_s26, 4294967168  ;;  %s736_s1 = sand.u32 1, %s4586_s23   ;;  %s740_s20 = scalar_lea.vmem [#allocation5], %s4901_s17 }
 0x14e   : > { %s737_s18 = scalar_lea.sflag [#allocation6], %s736_s1 }
 0x14f   : > { %4380 = dma.done.wait (%p5399_p6), %s737_s18, 128  }
 0x150   : > { %4382 = vsyncadd (%p5399_p6), %s737_s18, 4294967168  ;;  %p5400_p12 = scmp.eq.s32.totalorder %s4586_s23, 0 }
 0x152   : > { %4384 = dma.done.wait (%p5400_p12), [#allocation6], 16   ;;  %p5401_p8 = pmov %p5400_p12 }
 0x154   : > { %4386 = vsyncadd (%p5401_p8), [#allocation6], 4294967280  ;;  %p5402_p9 = pmov %p5401_p8 }
 0x155   : > { %p5403_p4 = pmov %p5401_p8 }
 0x156   : > { %4388 = dma.done.wait (%p5402_p9), [#allocation9], 32  }
 0x157   : > { %4390 = vsyncadd (%p5403_p4), [#allocation9], 4294967264  ;;  %p5404_p13 = pmov %p5403_p4 }
 0x158   : > { %p5405_p1 = pmov %p5403_p4 }
 0x159   : > { %4392 = dma.done.wait (%p5404_p13), [#allocation12], 528  }
 0x15a   : > { %4394 = vsyncadd (%p5405_p1), [#allocation12], 4294966768  ;;  %p5406_p3 = pmov %p5405_p1 }
 0x15b   : > { %p5407_p2 = pmov %p5405_p1 }
 0x15c   : > { %4396 = dma.done.wait (%p5406_p3), [#allocation15], 32  }
 0x15d   : > { %4398 = vsyncadd (%p5407_p2), [#allocation15], 4294967264  ;;  %p5408_p10 = pmov %p5405_p1 }
 0x15e   : > { %p5409_p11 = pmov %p5405_p1 }
 0x15f   : > { %4400 = dma.done.wait (%p5408_p10), [#allocation18], 16  }
 0x160   : > { %4402 = vsyncadd (%p5409_p11), [#allocation18], 4294967280  ;;  %vm847_vm0 = vcmask 261120   ;;  %v4935_v0 = vld [vmem:[%s731_s11] sm:$0xff]  ;;  %s5410_s22 = sld [smem:[#allocation32_spill]]  ;;  %v4435_v10 = vmov 0.0|0.0   ;;  %v840_v32 = vlaneseq }
 0x161   : > { %v848_v1 = vsel %vm847_vm0, %v4935_v0, 0.0  ;;  %3825 = vmatprep.subr.bf16.mxu0 %v4435_v10  ;;  %vm4436_vm1 = vmmov 0   ;;  %v4437_v13 = vmov 0.0   ;;  %s5411_s26 = sld [smem:[#allocation30_spill]]  ;;  %s5412_s18 = sld [smem:[#allocation31_spill]]  ;;  %vm968_vm2 = vcmask 64512  }
 0x162   : > { %849 = vadd.xlane.f32.xlu0 %v848_v1  ;;  %3650 = vmatprep.mubr.msk.f32.mxu0 %vm4436_vm1, %v4437_v13  ;;  %v3513_v24 = vld [vmem:[#allocation7] ss:$0 sm:$0xff]  ;;  %s4438_s0 = smov 96   ;;  %s4439_s19 = smov 120   ;;  %v4992_v33 = vshrl.u32 %v840_v32, 7  ;;  %v4994_v34 = vand.u32 127, %v840_v32 }
 0x163   : > { %3658 = vmatprep.subr.mxu1 %v4437_v13  ;;  %3660 = vmatprep.mubr.msk.f32.mxu1 %vm4436_vm1, %v4437_v13  ;;  %s4440_s13 = smov 88   ;;  %s4441_s24 = smov 56   ;;  %vm3225_vm4 = vcmask 523264  }
 0x164   : > { %vm844_vm3 = vcmp.le.s32.totalorder %v4994_v34, %v4992_v33  ;;  %s4442_s16 = smov 64   ;;  %s4443_s21 = smov 80  }
 0x165   : > { %s4444_s15 = smov 112   ;;  %s5413_s7 = sld [smem:[#allocation34_spill]] }
 0x166   : > { %v876_v7 = vld [vmem:[%s5410_s22] sm:$0xff]  ;;  %v877_v8 = vld [vmem:[%s5410_s22 + $0x8] sm:$0xff]  ;;  %v878_v9 = vld [vmem:[%s5410_s22 + $0x10] sm:$0xff]  ;;  %s4445_s1 = smov 48   ;;  %s4448_s9 = smov 40  }
 0x167   : > { %v3826_v11 = vpack.c.bf16 %v877_v8, %v876_v7  ;;  %v879_v12 = vld [vmem:[%s5410_s22 + $0x18] sm:$0xff]  ;;  %v3511_v19 = vld [vmem:[%s5411_s26] ss:$0 sm:$0xff]  ;;  %s5414_s4 = sld [smem:[#allocation36_spill]]  ;;  %s5415_s26 = sld [smem:[#allocation37_spill]] }
 0x168   : > { %v3829_v14 = vpack.c.bf16 %v879_v12, %v878_v9  ;;  %v3512_v21 = vld [vmem:[%s5412_s18] ss:$0 sm:$0xff]  ;;  %s5356_s18 = smov 104   ;;  %p5423_p7 = scmp.ne.s32.totalorder %s5393_s8, 0 }
 0x169   : > { %3827 = vmatpush3.bf16.msra.mxu0 %v3826_v11 }
 0x16a   : > { %3828 = vmatprep.subr.bf16.mxu0 %v4435_v10 }
 0x16b   : > { %v962_v53 = vld [vmem:[%s5413_s7 + $0x8] sm:$0xff]  ;;  %v961_v62 = vld [vmem:[%s5413_s7] sm:$0xff]  ;;  %v964_v33 = vld [vmem:[%s5413_s7 + $0x18] sm:$0xff] }
 0x16d   : > { %3830 = vmatpush3.bf16.msra.mxu0 %v3829_v14 }
 0x16e   : > { %3653 = vmatprep.subr.mxu0 %v4437_v13 }
 0x1ef   : > { %v850_v2 = vpop.xlane.xlu0 %849 }
 0x1f0   : > { %v852_v3 = vmul.f32 0.03125, %v850_v2 }
 0x1f2   : > { %v853_v4 = vsub.f32 %v4935_v0, %v852_v3 }
 0x1f4   : > { %v854_v5 = vmul.f32 %v853_v4, %v853_v4 }
 0x1f6   : > { %v855_v6 = vsel %vm847_vm0, %v854_v5, 0.0 }
 0x1f7   : > { %856 = vadd.xlane.f32.xlu0 %v855_v6 }
 0x284   : > { %v857_v15 = vpop.xlane.xlu0 %856 }
 0x285   : > { %v858_v16 = vmul.f32 0.03125, %v857_v15 }
 0x287   : > { %v859_v17 = vadd.f32 1e-05, %v858_v16 }
 0x289   : > { %4009 = vrsqrt.f32 %v859_v17 }
 0x293   : > { %v4010_v18 = vpop.eup %4009 }
 0x294   : > { %v861_v20 = vmul.f32 %v4010_v18, %v853_v4 }
 0x296   : > { %v868_v22 = vmul.f32 %v3511_v19, %v861_v20 }
 0x298   : > { %v875_v23 = vadd.f32 %v3512_v21, %v868_v22 }
 0x29a   : > { %3651 = vmatmul.mubr.msk.f32.vlgmr.msra.gmra.mrb[0].mxu0 %vm847_vm0, %v875_v23 }
 0x29b   : > { %3655 = vmatprep.mubr.msk.f32.mxu0 %vm4436_vm1, %v4437_v13 }
 0x36d   : > { %v956_v25 = vpop.f32.mrb[0].mxu0 }
 0x36e   : > { %v4970_v26 = vadd.f32 %v3513_v24, %v956_v25  ;;  %v3652_v27 = vpop.f32.mrb[1].mxu0 }
 0x370   : > { %966 = vrot.lane.b32.xlu1 %v4970_v26, %s4438_s0  ;;  %v4975_v28 = vmul.f32 0.35355338, %v4970_v26 }
 0x372   : > { %1132 = vrot.lane.b32.xlu0 %v4975_v28, %s4439_s19 }
 0x374   : > { %1134 = vrot.lane.b32.xlu1 %v4970_v26, %s4440_s13 }
 0x3e2   : > { %v967_v29 = vpop.permute.xlu1 %966 }
 0x3e3   : > { %3654 = vmatpush3.xpose.msk.msra.mxu0 %vm968_vm2, %v967_v29  ;;  %v963_v29 = vld [vmem:[%s5413_s7 + $0x10] sm:$0xff] }
 0x3e4   : > { %3663 = vmatprep.subr.mxu0 %v4437_v13  ;;  %v1133_v31 = vpop.permute.xlu0 %1132 }
 0x3e6   : > { %v1135_v30 = vpop.permute.xlu1 %1134  ;;  %3656 = vmatmul.mubr.msk.f32.vlgmr.msra.gmra.mrb[2].mxu0 %vm968_vm2, %v4975_v28 }
 0x3e7   : > { %3664 = vmatpush3.xpose.msk.msra.mxu0 %vm968_vm2, %v1135_v30  ;;  %3665 = vmatprep.mubr.msk.f32.mxu0 %vm4436_vm1, %v4437_v13 }
 0x3e8   : > { %3673 = vmatprep.subr.mxu0 %v4437_v13 }
 0x3ea   : > { %3666 = vmatmul.mubr.msk.f32.vlgmr.msra.gmra.mrb[4].mxu0 %vm968_vm2, %v1133_v31 }
 0x3eb   : > { %3675 = vmatprep.mubr.msk.f32.mxu0 %vm4436_vm1, %v4437_v13  ;;  %3674 = vmatpush3.msra.mxu0 %v962_v53 }
 0x3ec   : > { %3683 = vmatprep.subr.mxu0 %v4437_v13 }
 0x4b9   : > { %v1040_v35 = vpop.f32.mrb[2].mxu0 }
 0x4ba   : > { %v1044_v36 = vsel %vm844_vm3, %v1040_v35, -1e+09  ;;  %v3657_v37 = vpop.f32.mrb[3].mxu0 }
 0x4bb   : > { %v1045_v38 = vsel %vm968_vm2, %v1044_v36, -inf }
 0x4bc   : > { %1046 = vmax.xlane.f32.xlu1 %v1045_v38 }
 0x4bd   : > { %v1206_v39 = vpop.f32.mrb[4].mxu0 }
 0x4be   : > { %v1210_v40 = vsel %vm844_vm3, %v1206_v39, -1e+09  ;;  %v3667_v41 = vpop.f32.mrb[5].mxu0 }
 0x4bf   : > { %v1211_v42 = vsel %vm968_vm2, %v1210_v40, -inf }
 0x4c0   : > { %1212 = vmax.xlane.f32.xlu0 %v1211_v42 }
 0x4d6   : > { %1222 = vrot.lane.b32.xlu0 %v4970_v26, %s4441_s24  ;;  %s5355_s24 = smov 72  }
 0x549   : > { %v1047_v43 = vpop.xlane.xlu1 %1046 }
 0x54a   : > { %v1048_v44 = vsub.f32 %v1044_v36, %v1047_v43 }
 0x54c   : > { %v1049_v45 = vmul.f32 1.442695, %v1048_v44 }
 0x54d   : > { %v1213_v46 = vpop.xlane.xlu0 %1212 }
 0x54e   : > { %4011 = vpow2.f32 %v1049_v45  ;;  %v1214_v47 = vsub.f32 %v1210_v40, %v1213_v46 }
 0x550   : > { %v1215_v48 = vmul.f32 1.442695, %v1214_v47 }
 0x551   : > { %v1223_v59 = vpop.permute.xlu0 %1222 }
 0x552   : > { %4013 = vpow2.f32 %v1215_v48 }
 0x558   : > { %v4012_v49 = vpop.eup %4011 }
 0x559   : > { %v1051_v50 = vsel %vm968_vm2, %v4012_v49, 0.0 }
 0x55a   : > { %1052 = vadd.xlane.f32.xlu1 %v1051_v50 }
 0x55c   : > { %v4014_v51 = vpop.eup %4013 }
 0x55d   : > { %v1217_v52 = vsel %vm968_vm2, %v4014_v51, 0.0 }
 0x55e   : > { %1218 = vadd.xlane.f32.xlu1 %v1217_v52 }
 0x56f   : > { %1056 = vrot.lane.b32.xlu1 %v4970_v26, %s4442_s16  ;;  %s3562_s16 = sshll.u32 %s4586_s23, 7  ;;  %s4449_s23 = smov [#allocation19]  }
 0x573   : > { %1446 = vrot.lane.b32.xlu1 %v4970_v26, %s4443_s21 }
 0x577   : > { %1444 = vrot.lane.b32.xlu1 %v4975_v28, %s4444_s15 }
 0x5e7   : > { %v1053_v54 = vpop.xlane.xlu1 %1052 }
 0x5e8   : > { %4015 = vrcp.f32 %v1053_v54 }
 0x5eb   : > { %v1219_v55 = vpop.xlane.xlu1 %1218 }
 0x5ec   : > { %4017 = vrcp.f32 %v1219_v55 }
 0x5ef   : > { %v1057_v56 = vpop.permute.xlu1 %1056 }
 0x5f0   : > { %3659 = vmatpush3.msra.mxu1 %v1057_v56 }
 0x5f1   : > { %3668 = vmatprep.subr.mxu1 %v4437_v13 }
 0x5f2   : > { %v4016_v57 = vpop.eup %4015 }
 0x5f3   : > { %v1055_v58 = vmul.f32 %v4016_v57, %v4012_v49  ;;  %v1447_v2 = vpop.permute.xlu1 %1446 }
 0x5f5   : > { %3661 = vmatmul.mubr.msk.f32.vlgmr.msra.gmra.mrb[0].mxu1 %vm968_vm2, %v1055_v58 }
 0x5f6   : > { %v4018_v60 = vpop.eup %4017  ;;  %3669 = vmatpush3.msra.mxu1 %v1223_v59  ;;  %3670 = vmatprep.mubr.msk.f32.mxu1 %vm4436_vm1, %v4437_v13 }
 0x5f7   : > { %v1221_v61 = vmul.f32 %v4018_v60, %v4014_v51  ;;  %3678 = vmatprep.subr.mxu1 %v4437_v13  ;;  %v1445_v5 = vpop.permute.xlu1 %1444  ;;  %v3531_v51 = vld [vmem:[#allocation8] ss:$0 sm:$0xff] }
 0x5f9   : > { %3671 = vmatmul.mubr.msk.f32.vlgmr.msra.gmra.mrb[2].mxu1 %vm968_vm2, %v1221_v61 }
 0x5fa   : > { %3680 = vmatprep.mubr.msk.f32.mxu1 %vm4436_vm1, %v4437_v13  ;;  %3679 = vmatpush3.msra.mxu1 %v961_v62  ;;  %v2047_v62 = vld [vmem:[%s5331_s12] sm:$0xff] }
 0x5fb   : > { %3688 = vmatprep.subr.mxu1 %v4437_v13 }
 0x6c8   : > { %v1128_v63 = vpop.f32.mrb[0].mxu1 }
 0x6c9   : > { %v3662_v1 = vpop.f32.mrb[1].mxu1  ;;  %3681 = vmatmul.mubr.msk.f32.vlgmr.msra.gmra.mrb[4].mxu1 %vm968_vm2, %v1128_v63 }
 0x6ca   : > { %3690 = vmatprep.mubr.msk.f32.mxu1 %vm4436_vm1, %v4437_v13  ;;  %v1962_v1 = vld [vmem:[%s5329_s10] sm:$0xff] }
 0x6cc   : > { %v1294_v3 = vpop.f32.mrb[2].mxu1 }
 0x6cd   : > { %v3672_v4 = vpop.f32.mrb[3].mxu1  ;;  %3676 = vmatmul.mubr.msk.f32.vlgmr.msra.gmra.mrb[6].mxu0 %vm968_vm2, %v1294_v3 }
 0x6ce   : > { %3684 = vmatpush3.xpose.msk.msra.mxu0 %vm968_vm2, %v1447_v2  ;;  %3685 = vmatprep.mubr.msk.f32.mxu0 %vm4436_vm1, %v4437_v13  ;;  %v1963_v2 = vld [vmem:[%s5329_s10 + $0x8] sm:$0xff]  ;;  %v2049_v4 = vld [vmem:[%s5331_s12 + $0x10] sm:$0xff] }
 0x6cf   : > { %3693 = vmatprep.subr.mxu0 %v4437_v13  ;;  %v3832_v3 = vpack.c.bf16 %v1963_v2, %v1962_v1 }
 0x6d1   : > { %3686 = vmatmul.mubr.msk.f32.vlgmr.msra.gmra.mrb[8].mxu0 %vm968_vm2, %v1445_v5  ;;  %v2050_v5 = vld [vmem:[%s5331_s12 + $0x18] sm:$0xff] }
 0x6d2   : > { %3695 = vmatprep.mubr.msk.f32.mxu0 %vm4436_vm1, %v4437_v13  ;;  %3694 = vmatpush3.msra.mxu0 %v963_v29 }
 0x6d3   : > { %3703 = vmatprep.subr.mxu0 %v4437_v13 }
 0x79c   : > { %v1440_v6 = vpop.f32.mrb[4].mxu1 }
 0x79d   : > { %v3682_v7 = vpop.f32.mrb[5].mxu1 }
 0x79e   : > { %v1964_v7 = vld [vmem:[%s5329_s10 + $0x10] sm:$0xff] }
 0x7a0   : > { %v1367_v8 = vpop.f32.mrb[6].mxu0 }
 0x7a1   : > { %v1441_v9 = vadd.f32 %v1440_v6, %v1367_v8  ;;  %v3677_v11 = vpop.f32.mrb[7].mxu0  ;;  %v3841_v6 = vpack.c.bf16 %v2050_v5, %v2049_v4  ;;  %v1965_v8 = vld [vmem:[%s5329_s10 + $0x18] sm:$0xff] }
 0x7a2   : > { %v839_v11 = vld [vmem:[%s740_s20] sm:$0xff] }
 0x7a4   : > { %v1518_v12 = vpop.f32.mrb[8].mxu0 }
 0x7a5   : > { %v1522_v14 = vsel %vm844_vm3, %v1518_v12, -1e+09  ;;  %v3687_v15 = vpop.f32.mrb[9].mxu0 }
 0x7a6   : > { %v1523_v16 = vsel %vm968_vm2, %v1522_v14, -inf }
 0x7a7   : > { %1524 = vmax.xlane.f32.xlu1 %v1523_v16 }
 0x7b8   : > { %1534 = vrot.lane.b32.xlu1 %v4970_v26, %s4445_s1 }
 0x7bc   : > { %1684 = vrot.lane.b32.xlu1 %v4975_v28, %s5356_s18 }
 0x834   : > { %v1525_v17 = vpop.xlane.xlu1 %1524 }
 0x835   : > { %v1526_v18 = vsub.f32 %v1522_v14, %v1525_v17  ;;  %v3532_v17 = vld [vmem:[%s5414_s4] ss:$0 sm:$0xff]  ;;  %s837_s4 = scalar_lea.vmem [#allocation19], %s4901_s17  ;;  %s4335_s17 = sshll.u32 %s4449_s23, 4  ;;  %s4336_s17 = int_to_ptr.vmem [resolvable:$false] %s4335_s17 }
 0x836   : > { %s3315_s20 = sshll.u32 %s837_s4, 4  ;;  %s4337_s18 = scalar_lea.vmem %s4336_s17, 256  ;;  %s5276_s20 = int_to_ptr.vmem [resolvable:$true] %s3315_s20 }
 0x837   : > { %v1527_v19 = vmul.f32 1.442695, %v1526_v18  ;;  %s4331_s11 = scalar_lea.vmem %s5276_s20, 128  ;;  %p4338_p12 = scmp.lt.s32.totalorder %s5276_s20, %s4336_s17 }
 0x838   : > { %v1535_v20 = vpop.permute.xlu1 %1534  ;;  %p4332_p5 = scmp.ne.s32.totalorder %s5276_s20, %s4331_s11  ;;  %p4339_p8 = scmp.lt.s32.totalorder %s4337_s18, %s4331_s11 }
 0x839   : > { %4019 = vpow2.f32 %v1527_v19  ;;  %3689 = vmatpush3.msra.mxu1 %v1535_v20  ;;  %v3533_v19 = vld [vmem:[%s5415_s26] ss:$0 sm:$0xff]  ;;  %s5419_s26 = sld [smem:[#allocation46_spill]] }
 0x83a   : > { %3698 = vmatprep.subr.mxu1 %v4437_v13  ;;  %p4333_p0 = pnand %p4332_p5, %p5423_p7  ;;  %p4340_p9 = por %p4339_p8, %p4338_p12 }
 0x83c   : > { %v1685_v28 = vpop.permute.xlu1 %1684  ;;  %p4334_p6 = pneg %p4333_p0 }
 0x83e   : > { %p4341_p4 = pnand %p4340_p9, %p4334_p6 }
 0x843   : > { %v4020_v21 = vpop.eup %4019 }
 0x844   : > { %v1529_v22 = vsel %vm968_vm2, %v4020_v21, 0.0 }
 0x845   : > { %1530 = vadd.xlane.f32.xlu0 %v1529_v22  ;;  %v3536_v22 = vld [vmem:[#allocation11] ss:$0 sm:$0xff] }
 0x85b   : > { %1686 = vrot.lane.b32.xlu0 %v4970_v26, %s5355_s24 }
 0x8d2   : > { %v1531_v23 = vpop.xlane.xlu0 %1530 }
 0x8d3   : > { %4021 = vrcp.f32 %v1531_v23 }
 0x8d6   : > { %v1687_v27 = vpop.permute.xlu0 %1686 }
 0x8dd   : > { %v4022_v24 = vpop.eup %4021 }
 0x8de   : > { %v1533_v25 = vmul.f32 %v4022_v24, %v4020_v21 }
 0x8e0   : > { %3691 = vmatmul.mubr.msk.f32.vlgmr.msra.gmra.mrb[6].mxu1 %vm968_vm2, %v1533_v25 }
 0x8e1   : > { %3699 = vmatpush3.xpose.msk.msra.mxu1 %vm968_vm2, %v1687_v27  ;;  %3700 = vmatprep.mubr.msk.f32.mxu1 %vm4436_vm1, %v4437_v13  ;;  %v3534_v27 = vld [vmem:[#allocation10] ss:$0 sm:$0xff] }
 0x8e2   : > { %3708 = vmatprep.subr.mxu1 %v4437_v13 }
 0x8e4   : > { %3701 = vmatmul.mubr.msk.f32.vlgmr.msra.gmra.mrb[8].mxu1 %vm968_vm2, %v1685_v28 }
 0x8e5   : > { %3710 = vmatprep.mubr.msk.f32.mxu1 %vm4436_vm1, %v4437_v13  ;;  %3709 = vmatpush3.msra.mxu1 %v964_v33 }
 0x8e6   : > { %3837 = vmatprep.subr.bf16.mxu1 %v4435_v10 }
 0x9b3   : > { %v1606_v30 = vpop.f32.mrb[6].mxu1 }
 0x9b4   : > { %v3692_v31 = vpop.f32.mrb[7].mxu1  ;;  %3696 = vmatmul.mubr.msk.f32.vlgmr.msra.gmra.mrb[10].mxu0 %vm968_vm2, %v1606_v30 }
 0x9b5   : > { %3705 = vmatprep.mubr.msk.f32.mxu0 %vm4436_vm1, %v4437_v13 }
 0x9b7   : > { %v1758_v32 = vpop.f32.mrb[8].mxu1 }
 0x9b8   : > { %v1762_v35 = vsel %vm844_vm3, %v1758_v32, -1e+09  ;;  %v3702_v36 = vpop.f32.mrb[9].mxu1 }
 0x9b9   : > { %v1763_v37 = vsel %vm968_vm2, %v1762_v35, -inf }
 0x9ba   : > { %1764 = vmax.xlane.f32.xlu1 %v1763_v37 }
 0xa47   : > { %v1765_v38 = vpop.xlane.xlu1 %1764 }
 0xa48   : > { %v1766_v39 = vsub.f32 %v1762_v35, %v1765_v38 }
 0xa4a   : > { %v1767_v40 = vmul.f32 1.442695, %v1766_v39 }
 0xa4c   : > { %4023 = vpow2.f32 %v1767_v40 }
 0xa56   : > { %v4024_v41 = vpop.eup %4023 }
 0xa57   : > { %v1769_v42 = vsel %vm968_vm2, %v4024_v41, 0.0 }
 0xa58   : > { %1770 = vadd.xlane.f32.xlu0 %v1769_v42 }
 0xa6e   : > { %1774 = vrot.lane.b32.xlu0 %v4970_v26, %s4448_s9 }
 0xa87   : > { %v1679_v34 = vpop.f32.mrb[10].mxu0 }
 0xa88   : > { %v1683_v43 = vadd.f32 %v1679_v34, %v1441_v9  ;;  %v3697_v44 = vpop.f32.mrb[11].mxu0  ;;  %v3835_v9 = vpack.c.bf16 %v1965_v8, %v1964_v7 }
 0xae5   : > { %v1771_v45 = vpop.xlane.xlu0 %1770 }
 0xae6   : > { %4025 = vrcp.f32 %v1771_v45 }
 0xae9   : > { %v1775_v46 = vpop.permute.xlu0 %1774 }
 0xaea   : > { %3704 = vmatpush3.msra.mxu0 %v1775_v46 }
 0xaeb   : > { %3831 = vmatprep.subr.bf16.mxu0 %v4435_v10 }
 0xaf0   : > { %v4026_v47 = vpop.eup %4025 }
 0xaf1   : > { %v1773_v48 = vmul.f32 %v4026_v47, %v4024_v41 }
 0xaf3   : > { %3706 = vmatmul.mubr.msk.f32.vlgmr.msra.gmra.mrb[12].mxu0 %vm968_vm2, %v1773_v48 }
 0xaf4   : > { %3721 = vmatprep.mubr.msk.f32.mxu0 %vm4436_vm1, %v4437_v13  ;;  %3833 = vmatpush3.bf16.msra.mxu0 %v3832_v3 }
 0xaf5   : > { %3834 = vmatprep.subr.bf16.mxu0 %v4435_v10 }
 0xaf8   : > { %3836 = vmatpush3.bf16.msra.mxu0 %v3835_v9 }
 0xaf9   : > { %3735 = vmatprep.subr.mxu0 %v4437_v13 }
 0xbc6   : > { %v1846_v26 = vpop.f32.mrb[12].mxu0 }
 0xbc7   : > { %v3707_v49 = vpop.f32.mrb[13].mxu0  ;;  %3711 = vmatmul.mubr.msk.f32.vlgmr.msra.gmra.mrb[10].mxu1 %vm968_vm2, %v1846_v26 }
 0xbc8   : > { %3732 = vmatprep.mubr.msk.f32.mxu1 %vm4436_vm1, %v4437_v13 }
 0xc9a   : > { %v1919_v50 = vpop.f32.mrb[10].mxu1 }
 0xc9b   : > { %v1923_v52 = vadd.f32 %v1919_v50, %v1683_v43  ;;  %v3712_v53 = vpop.f32.mrb[11].mxu1 }
 0xc9c   : > { %v2132_v53 = vld [vmem:[#allocation13 + $0x8] sm:$0xff] }
 0xc9d   : > { %v1931_v54 = vadd.f32 %v3531_v51, %v1923_v52 }
 0xc9f   : > { %v5085_v55 = vadd.f32 %v1931_v54, %v4935_v0  ;;  %v2048_v0 = vld [vmem:[%s5331_s12 + $0x8] sm:$0xff] }
 0xca0   : > { %v3838_v63 = vpack.c.bf16 %v2048_v0, %v2047_v62 }
 0xca1   : > { %v1935_v56 = vsel %vm847_vm0, %v5085_v55, 0.0 }
 0xca2   : > { %1936 = vadd.xlane.f32.xlu1 %v1935_v56  ;;  %3839 = vmatpush3.bf16.msra.mxu1 %v3838_v63 }
 0xca3   : > { %3840 = vmatprep.subr.bf16.mxu1 %v4435_v10 }
 0xca6   : > { %3842 = vmatpush3.bf16.msra.mxu1 %v3841_v6 }
 0xca7   : > { %3740 = vmatprep.subr.mxu1 %v4437_v13 }
 0xca9   : > { %3733 = vmatmul.mubr.msk.f32.vlgmr.msra.gmra.mrb[12].mxu1 %vm847_vm0, %v839_v11 }
 0xcaa   : > { %3742 = vmatprep.mubr.msk.f32.mxu1 %vm4436_vm1, %v4437_v13 }
 0xd2f   : > { %v1937_v57 = vpop.xlane.xlu1 %1936 }
 0xd30   : > { %v1938_v58 = vmul.f32 0.03125, %v1937_v57 }
 0xd32   : > { %v1939_v59 = vsub.f32 %v5085_v55, %v1938_v58 }
 0xd34   : > { %v1940_v60 = vmul.f32 %v1939_v59, %v1939_v59 }
 0xd36   : > { %v1941_v61 = vsel %vm847_vm0, %v1940_v60, 0.0 }
 0xd37   : > { %1942 = vadd.xlane.f32.xlu1 %v1941_v61 }
 0xd7c   : > { %v2127_v23 = vpop.f32.mrb[12].mxu1 }
 0xd7d   : > { %v5133_v24 = vadd.f32 %v3536_v22, %v2127_v23  ;;  %v3734_v25 = vpop.f32.mrb[13].mxu1  ;;  %v2133_v23 = vld [vmem:[#allocation13 + $0x10] sm:$0xff] }
 0xd7f   : > { %2300 = vrot.lane.b32.xlu1 %v5133_v24, %s4439_s19 }
 0xdc4   : > { %v1943_v12 = vpop.xlane.xlu1 %1942 }
 0xdc5   : > { %v1944_v14 = vmul.f32 0.03125, %v1943_v12 }
 0xdc7   : > { %v1945_v15 = vadd.f32 1e-05, %v1944_v14 }
 0xdc9   : > { %4027 = vrsqrt.f32 %v1945_v15 }
 0xdd3   : > { %v4028_v16 = vpop.eup %4027 }
 0xdd4   : > { %v1947_v18 = vmul.f32 %v4028_v16, %v1939_v59  ;;  %v2131_v59 = vld [vmem:[#allocation13] sm:$0xff] }
 0xdd6   : > { %v1954_v20 = vmul.f32 %v3532_v17, %v1947_v18 }
 0xdd8   : > { %v1961_v21 = vadd.f32 %v3533_v19, %v1954_v20 }
 0xdda   : > { %3722 = vmatmul.mubr.msk.f32.vlgmr.msra.gmra.mrb[14].mxu0 %vm847_vm0, %v1961_v21 }
 0xddb   : > { %3737 = vmatprep.mubr.msk.f32.mxu0 %vm4436_vm1, %v4437_v13  ;;  %3736 = vmatpush3.xpose.msk.msra.mxu0 %vm968_vm2, %v5133_v24 }
 0xddc   : > { %3745 = vmatprep.subr.mxu0 %v4437_v13 }
 0xdf1   : > { %v2301_v32 = vpop.permute.xlu1 %2300 }
 0xead   : > { %v2042_v28 = vpop.f32.mrb[14].mxu0 }
 0xeae   : > { %v2043_v29 = vadd.f32 %v3534_v27, %v2042_v28  ;;  %v3723_v30 = vpop.f32.mrb[15].mxu0 }
 0xeb0   : > { %v5140_v31 = vmul.f32 0.35355338, %v2043_v29 }
 0xeb2   : > { %2298 = vrot.lane.b32.xlu0 %v5140_v31, %s4439_s19  ;;  %3738 = vmatmul.mubr.msk.f32.vlgmr.msra.gmra.mrb[16].mxu0 %vm968_vm2, %v5140_v31  ;;  %s5417_s19 = smov 72  }
 0xeb3   : > { %3746 = vmatpush3.xpose.msk.msra.mxu0 %vm968_vm2, %v2301_v32  ;;  %3747 = vmatprep.mubr.msk.f32.mxu0 %vm4436_vm1, %v4437_v13 }
 0xeb4   : > { %3755 = vmatprep.subr.mxu0 %v4437_v13 }
 0xf24   : > { %v2299_v35 = vpop.permute.xlu0 %2298 }
 0xf25   : > { %3748 = vmatmul.mubr.msk.f32.vlgmr.msra.gmra.mrb[18].mxu0 %vm968_vm2, %v2299_v35 }
 0xf26   : > { %3757 = vmatprep.mubr.msk.f32.mxu0 %vm4436_vm1, %v4437_v13  ;;  %3756 = vmatpush3.msra.mxu0 %v2132_v53 }
 0xf27   : > { %3765 = vmatprep.subr.mxu0 %v4437_v13 }
 0xf85   : > { %v2207_v36 = vpop.f32.mrb[16].mxu0 }
 0xf86   : > { %v3739_v37 = vpop.f32.mrb[17].mxu0  ;;  %v2211_v38 = vsel %vm968_vm2, %v2207_v36, -inf }
 0xf87   : > { %2212 = vmax.xlane.f32.xlu0 %v2211_v38  ;;  %v2134_v38 = vld [vmem:[#allocation13 + $0x18] sm:$0xff] }
 0xff8   : > { %v2372_v39 = vpop.f32.mrb[18].mxu0 }
 0xff9   : > { %v3749_v40 = vpop.f32.mrb[19].mxu0  ;;  %v2376_v41 = vsel %vm968_vm2, %v2372_v39, -inf }
 0xffa   : > { %2377 = vmax.xlane.f32.xlu1 %v2376_v41 }
0x100b   : > { %2222 = vrot.lane.b32.xlu1 %v5133_v24, %s4438_s0  ;;  %s5416_s0 = smov 104  }
0x100f   : > { %2611 = vrot.lane.b32.xlu1 %v5133_v24, %s4444_s15 }
0x1013   : > { %2609 = vrot.lane.b32.xlu1 %v5140_v31, %s4444_s15  ;;  %s5418_s15 = sld [smem:[#allocation44_spill]] }
0x1014   : > { %v2213_v42 = vpop.xlane.xlu0 %2212 }
0x1015   : > { %v2214_v33 = vsub.f32 %v2207_v36, %v2213_v42 }
0x1017   : > { %v2215_v34 = vmul.f32 1.442695, %v2214_v33 }
0x1019   : > { %4029 = vpow2.f32 %v2215_v34 }
0x1023   : > { %v4030_v43 = vpop.eup %4029 }
0x1024   : > { %v2217_v44 = vsel %vm968_vm2, %v4030_v43, 0.0 }
0x1025   : > { %2218 = vadd.xlane.f32.xlu0 %v2217_v44 }
0x1087   : > { %v2378_v45 = vpop.xlane.xlu1 %2377 }
0x1088   : > { %v2379_v46 = vsub.f32 %v2372_v39, %v2378_v45 }
0x108a   : > { %v2380_v47 = vmul.f32 1.442695, %v2379_v46  ;;  %v3554_v46 = vld [vmem:[#allocation14] ss:$0 sm:$0xff] }
0x108b   : > { %v2223_v48 = vpop.permute.xlu1 %2222 }
0x108c   : > { %4031 = vpow2.f32 %v2380_v47  ;;  %3741 = vmatpush3.msra.mxu1 %v2223_v48 }
0x108d   : > { %3750 = vmatprep.subr.mxu1 %v4437_v13 }
0x108f   : > { %v2612_v62 = vpop.permute.xlu1 %2611 }
0x1093   : > { %v2610_v1 = vpop.permute.xlu1 %2609 }
0x1096   : > { %v4032_v26 = vpop.eup %4031 }
0x1097   : > { %v2382_v49 = vsel %vm968_vm2, %v4032_v26, 0.0 }
0x1098   : > { %2383 = vadd.xlane.f32.xlu0 %v2382_v49 }
0x10ae   : > { %2387 = vrot.lane.b32.xlu0 %v5133_v24, %s4440_s13 }
0x10b2   : > { %v2219_v50 = vpop.xlane.xlu0 %2218 }
0x10b3   : > { %4033 = vrcp.f32 %v2219_v50 }
0x10bd   : > { %v4034_v51 = vpop.eup %4033 }
0x10be   : > { %v2221_v52 = vmul.f32 %v4034_v51, %v4030_v43 }
0x10c0   : > { %3743 = vmatmul.mubr.msk.f32.vlgmr.msra.gmra.mrb[14].mxu1 %vm968_vm2, %v2221_v52 }
0x10c1   : > { %3752 = vmatprep.mubr.msk.f32.mxu1 %vm4436_vm1, %v4437_v13 }
0x1125   : > { %v2384_v54 = vpop.xlane.xlu0 %2383 }
0x1126   : > { %4035 = vrcp.f32 %v2384_v54 }
0x1129   : > { %v2388_v56 = vpop.permute.xlu0 %2387 }
0x112a   : > { %3751 = vmatpush3.msra.mxu1 %v2388_v56 }
0x112b   : > { %3760 = vmatprep.subr.mxu1 %v4437_v13 }
0x1130   : > { %v4036_v57 = vpop.eup %4035 }
0x1131   : > { %v2386_v58 = vmul.f32 %v4036_v57, %v4032_v26  ;;  %v3126_v57 = vld [vmem:[%s5418_s15 + $0x8] sm:$0xff] }
0x1133   : > { %3753 = vmatmul.mubr.msk.f32.vlgmr.msra.gmra.mrb[16].mxu1 %vm968_vm2, %v2386_v58 }
0x1134   : > { %3761 = vmatpush3.msra.mxu1 %v2131_v59  ;;  %3762 = vmatprep.mubr.msk.f32.mxu1 %vm4436_vm1, %v4437_v13  ;;  %v3128_v59 = vld [vmem:[%s5418_s15 + $0x18] sm:$0xff] }
0x1135   : > { %3770 = vmatprep.subr.mxu1 %v4437_v13 }
0x1193   : > { %v2294_v60 = vpop.f32.mrb[14].mxu1 }
0x1194   : > { %v3744_v61 = vpop.f32.mrb[15].mxu1  ;;  %3763 = vmatmul.mubr.msk.f32.vlgmr.msra.gmra.mrb[18].mxu1 %vm968_vm2, %v2294_v60 }
0x1195   : > { %3772 = vmatprep.mubr.msk.f32.mxu1 %vm4436_vm1, %v4437_v13  ;;  %v3210_v61 = vld [vmem:[%s5419_s26] sm:$0xff] }
0x1206   : > { %v2459_v0 = vpop.f32.mrb[16].mxu1 }
0x1207   : > { %v3754_v63 = vpop.f32.mrb[17].mxu1  ;;  %3758 = vmatmul.mubr.msk.f32.vlgmr.msra.gmra.mrb[20].mxu0 %vm968_vm2, %v2459_v0  ;;  %v3212_v0 = vld [vmem:[%s5419_s26 + $0x10] sm:$0xff] }
0x1208   : > { %3766 = vmatpush3.xpose.msk.msra.mxu0 %vm968_vm2, %v2612_v62  ;;  %3767 = vmatprep.mubr.msk.f32.mxu0 %vm4436_vm1, %v4437_v13  ;;  %v3211_v62 = vld [vmem:[%s5419_s26 + $0x8] sm:$0xff] }
0x1209   : > { %3775 = vmatprep.subr.mxu0 %v4437_v13  ;;  %v3850_v63 = vpack.c.bf16 %v3211_v62, %v3210_v61 }
0x120b   : > { %3768 = vmatmul.mubr.msk.f32.vlgmr.msra.gmra.mrb[22].mxu0 %vm968_vm2, %v2610_v1  ;;  %v3213_v1 = vld [vmem:[%s5419_s26 + $0x18] sm:$0xff] }
0x120c   : > { %3777 = vmatprep.mubr.msk.f32.mxu0 %vm4436_vm1, %v4437_v13  ;;  %3776 = vmatpush3.msra.mxu0 %v2133_v23 }
0x120d   : > { %3785 = vmatprep.subr.mxu0 %v4437_v13 }
0x1267   : > { %v2605_v2 = vpop.f32.mrb[18].mxu1 }
0x1268   : > { %v3764_v3 = vpop.f32.mrb[19].mxu1 }
0x1269   : > { %v3214_v3 = vld [vmem:[%s5419_s26 + $0x20] sm:$0xff] }
0x12da   : > { %v2532_v4 = vpop.f32.mrb[20].mxu0 }
0x12db   : > { %v2606_v5 = vadd.f32 %v2605_v2, %v2532_v4  ;;  %v3759_v6 = vpop.f32.mrb[21].mxu0  ;;  %v3853_v2 = vpack.c.bf16 %v3213_v1, %v3212_v0  ;;  %v3215_v4 = vld [vmem:[%s5419_s26 + $0x28] sm:$0xff] }
0x12de   : > { %v2683_v7 = vpop.f32.mrb[22].mxu0 }
0x12df   : > { %v3769_v8 = vpop.f32.mrb[23].mxu0  ;;  %v2687_v9 = vsel %vm968_vm2, %v2683_v7, -inf }
0x12e0   : > { %2688 = vmax.xlane.f32.xlu0 %v2687_v9 }
0x12f6   : > { %2698 = vrot.lane.b32.xlu0 %v5133_v24, %s4443_s21  ;;  %s5421_s21 = sld [smem:[#allocation43_spill]] }
0x12fa   : > { %2848 = vrot.lane.b32.xlu0 %v5140_v31, %s5416_s0 }
0x136d   : > { %v2689_v11 = vpop.xlane.xlu0 %2688 }
0x136e   : > { %v2690_v12 = vsub.f32 %v2683_v7, %v2689_v11 }
0x1370   : > { %v2691_v14 = vmul.f32 1.442695, %v2690_v12 }
0x1371   : > { %v2699_v15 = vpop.permute.xlu0 %2698 }
0x1372   : > { %4037 = vpow2.f32 %v2691_v14  ;;  %3771 = vmatpush3.msra.mxu1 %v2699_v15  ;;  %v3556_v14 = vld [vmem:[%s5421_s21] ss:$0 sm:$0xff]  ;;  %s3302_s21 = scalar_lea.sflag [#allocation4], %s4898_s5 }
0x1373   : > { %3780 = vmatprep.subr.mxu1 %v4437_v13 }
0x1375   : > { %v2849_v22 = vpop.permute.xlu0 %2848 }
0x137c   : > { %v4038_v16 = vpop.eup %4037 }
0x137d   : > { %v2693_v17 = vsel %vm968_vm2, %v4038_v16, 0.0 }
0x137e   : > { %2694 = vadd.xlane.f32.xlu1 %v2693_v17  ;;  %v3217_v17 = vld [vmem:[%s5419_s26 + $0x38] sm:$0xff] }
0x138f   : > { %2850 = vrot.lane.b32.xlu1 %v5133_v24, %s5416_s0  ;;  %s5420_s0 = sld [smem:[#allocation42_spill]] }
0x1395   : > { %v3555_v11 = vld [vmem:[%s5420_s0] ss:$0 sm:$0xff] }
0x140b   : > { %v2695_v18 = vpop.xlane.xlu1 %2694 }
0x140c   : > { %4039 = vrcp.f32 %v2695_v18 }
0x140f   : > { %v2851_v21 = vpop.permute.xlu1 %2850 }
0x1416   : > { %v4040_v19 = vpop.eup %4039 }
0x1417   : > { %v2697_v20 = vmul.f32 %v4040_v19, %v4038_v16  ;;  %v3557_v19 = vld [vmem:[#allocation16] ss:$0 sm:$0xff] }
0x1419   : > { %3773 = vmatmul.mubr.msk.f32.vlgmr.msra.gmra.mrb[20].mxu1 %vm968_vm2, %v2697_v20 }
0x141a   : > { %3781 = vmatpush3.xpose.msk.msra.mxu1 %vm968_vm2, %v2851_v21  ;;  %3782 = vmatprep.mubr.msk.f32.mxu1 %vm4436_vm1, %v4437_v13 }
0x141b   : > { %3790 = vmatprep.subr.mxu1 %v4437_v13 }
0x141d   : > { %3783 = vmatmul.mubr.msk.f32.vlgmr.msra.gmra.mrb[22].mxu1 %vm968_vm2, %v2849_v22 }
0x141e   : > { %3792 = vmatprep.mubr.msk.f32.mxu1 %vm4436_vm1, %v4437_v13  ;;  %3791 = vmatpush3.msra.mxu1 %v2134_v38 }
0x141f   : > { %3849 = vmatprep.subr.bf16.mxu1 %v4435_v10 }
0x14ec   : > { %v2770_v25 = vpop.f32.mrb[20].mxu1 }
0x14ed   : > { %v3774_v27 = vpop.f32.mrb[21].mxu1  ;;  %3778 = vmatmul.mubr.msk.f32.vlgmr.msra.gmra.mrb[24].mxu0 %vm968_vm2, %v2770_v25  ;;  %v3559_v25 = vld [vmem:[#allocation17] ss:$0 sm:$0xff] }
0x14ee   : > { %3787 = vmatprep.mubr.msk.f32.mxu0 %vm4436_vm1, %v4437_v13 }
0x14f0   : > { %v2922_v28 = vpop.f32.mrb[22].mxu1 }
0x14f1   : > { %v3784_v29 = vpop.f32.mrb[23].mxu1  ;;  %v2926_v30 = vsel %vm968_vm2, %v2922_v28, -inf }
0x14f2   : > { %2927 = vmax.xlane.f32.xlu1 %v2926_v30 }
0x157f   : > { %v2928_v31 = vpop.xlane.xlu1 %2927 }
0x1580   : > { %v2929_v32 = vsub.f32 %v2922_v28, %v2928_v31 }
0x1582   : > { %v2930_v35 = vmul.f32 1.442695, %v2929_v32 }
0x1584   : > { %4041 = vpow2.f32 %v2930_v35 }
0x158e   : > { %v4042_v36 = vpop.eup %4041 }
0x158f   : > { %v2932_v37 = vsel %vm968_vm2, %v4042_v36, 0.0 }
0x1590   : > { %2933 = vadd.xlane.f32.xlu0 %v2932_v37 }
0x15a6   : > { %2937 = vrot.lane.b32.xlu0 %v5133_v24, %s5417_s19  ;;  %s5422_s19 = sld [smem:[#allocation48_spill]] }
0x15ac   : > { %s5274_s13 = scalar_lea.hbm %s5422_s19, %s3562_s16 }
0x15c0   : > { %v2843_v39 = vpop.f32.mrb[24].mxu0 }
0x15c1   : > { %v2847_v40 = vadd.f32 %v2843_v39, %v2606_v5  ;;  %v3779_v41 = vpop.f32.mrb[25].mxu0  ;;  %v3856_v5 = vpack.c.bf16 %v3215_v4, %v3214_v3 }
0x161d   : > { %v2934_v42 = vpop.xlane.xlu0 %2933 }
0x161e   : > { %4043 = vrcp.f32 %v2934_v42 }
0x1621   : > { %v2938_v33 = vpop.permute.xlu0 %2937 }
0x1622   : > { %3786 = vmatpush3.msra.mxu0 %v2938_v33 }
0x1623   : > { %3843 = vmatprep.subr.bf16.mxu0 %v4435_v10 }
0x1628   : > { %v4044_v34 = vpop.eup %4043 }
0x1629   : > { %v2936_v43 = vmul.f32 %v4044_v34, %v4042_v36 }
0x162b   : > { %3788 = vmatmul.mubr.msk.f32.vlgmr.msra.gmra.mrb[26].mxu0 %vm968_vm2, %v2936_v43 }
0x162c   : > { %3803 = vmatprep.mubr.msk.f32.mxu0 %vm4436_vm1, %v4437_v13 }
0x16fe   : > { %v3009_v24 = vpop.f32.mrb[26].mxu0 }
0x16ff   : > { %v3789_v44 = vpop.f32.mrb[27].mxu0  ;;  %3793 = vmatmul.mubr.msk.f32.vlgmr.msra.gmra.mrb[24].mxu1 %vm968_vm2, %v3009_v24 }
0x1700   : > { %3822 = vmatprep.mubr.msk.f32.mxu1 %vm4436_vm1, %v4437_v13  ;;  %v3125_v13 = vld [vmem:[%s5418_s15] sm:$0xff]  ;;  %3851 = vmatpush3.bf16.msra.mxu1 %v3850_v63 }
0x1701   : > { %v3844_v58 = vpack.c.bf16 %v3126_v57, %v3125_v13  ;;  %3852 = vmatprep.subr.bf16.mxu1 %v4435_v10 }
0x1703   : > { %3845 = vmatpush3.bf16.msra.mxu0 %v3844_v58 }
0x1704   : > { %3846 = vmatprep.subr.bf16.mxu0 %v4435_v10  ;;  %3854 = vmatpush3.bf16.msra.mxu1 %v3853_v2 }
0x1705   : > { %3855 = vmatprep.subr.bf16.mxu1 %v4435_v10 }
0x1708   : > { %3857 = vmatpush3.bf16.msra.mxu1 %v3856_v5 }
0x1709   : > { %3858 = vmatprep.subr.bf16.mxu1 %v4435_v10  ;;  %v3216_v10 = vld [vmem:[%s5419_s26 + $0x30] sm:$0xff] }
0x170a   : > { %v3859_v18 = vpack.c.bf16 %v3217_v17, %v3216_v10 }
0x170c   : > { %3860 = vmatpush3.bf16.msra.mxu1 %v3859_v18 }
0x17d2   : > { %v3082_v45 = vpop.f32.mrb[24].mxu1 }
0x17d3   : > { %v3086_v47 = vadd.f32 %v3082_v45, %v2847_v40  ;;  %v3794_v48 = vpop.f32.mrb[25].mxu1 }
0x17d5   : > { %v3094_v26 = vadd.f32 %v3554_v46, %v3086_v47 }
0x17d7   : > { %v3095_v49 = vadd.f32 %v3094_v26, %v5085_v55  ;;  %v3127_v55 = vld [vmem:[%s5418_s15 + $0x10] sm:$0xff] }
0x17d8   : > { %v3847_v60 = vpack.c.bf16 %v3128_v59, %v3127_v55 }
0x17d9   : > { %v3098_v50 = vsel %vm847_vm0, %v3095_v49, 0.0 }
0x17da   : > { %3099 = vadd.xlane.f32.xlu1 %v3098_v50  ;;  %3848 = vmatpush3.bf16.msra.mxu0 %v3847_v60 }
0x1867   : > { %v3100_v51 = vpop.xlane.xlu1 %3099 }
0x1868   : > { %v3101_v52 = vmul.f32 0.03125, %v3100_v51 }
0x186a   : > { %v3102_v53 = vsub.f32 %v3095_v49, %v3101_v52 }
0x186c   : > { %v3103_v54 = vmul.f32 %v3102_v53, %v3102_v53 }
0x186e   : > { %v3104_v56 = vsel %vm847_vm0, %v3103_v54, 0.0 }
0x186f   : > { %3105 = vadd.xlane.f32.xlu1 %v3104_v56 }
0x18fc   : > { %v3106_v6 = vpop.xlane.xlu1 %3105 }
0x18fd   : > { %v3107_v7 = vmul.f32 0.03125, %v3106_v6 }
0x18ff   : > { %v3108_v8 = vadd.f32 1e-05, %v3107_v7 }
0x1901   : > { %4045 = vrsqrt.f32 %v3108_v8 }
0x190b   : > { %v4046_v9 = vpop.eup %4045 }
0x190c   : > { %v3110_v12 = vmul.f32 %v4046_v9, %v3102_v53 }
0x190e   : > { %v3117_v15 = vmul.f32 %v3555_v11, %v3110_v12 }
0x1910   : > { %v3124_v16 = vadd.f32 %v3556_v14, %v3117_v15 }
0x1912   : > { %3804 = vmatmul.mubr.msk.f32.vlgmr.msra.gmra.mrb[28].mxu0 %vm847_vm0, %v3124_v16 }
0x19e5   : > { %v3205_v20 = vpop.f32.mrb[28].mxu0 }
0x19e6   : > { %v3206_v21 = vadd.f32 %v3557_v19, %v3205_v20  ;;  %v3805_v22 = vpop.f32.mrb[29].mxu0 }
0x19e8   : > { %v3209_v23 = vmax.f32 %v3206_v21, 0.0 }
0x19ea   : > { %3823 = vmatmul.mubr.msk.f32.vlgmr.msra.gmra.mrb[26].mxu1 %vm3225_vm4, %v3209_v23 }
0x1abd   : > { %v3295_v27 = vpop.f32.mrb[26].mxu1 }
0x1abe   : > { %v3296_v28 = vadd.f32 %v3559_v25, %v3295_v27  ;;  %v3824_v29 = vpop.f32.mrb[27].mxu1 }
0x1ac0   : > { %v3299_v30 = vadd.f32 %v3296_v28, %v3095_v49 }
0x1ac2   : > { %3300 = vst.msk [vmem:[%s837_s4] sm:$0xff] %vm847_vm0, %v3299_v30 }
0x1ac3   : > { %4344 = shalt.err (!%p4341_p4)
}
0x1ac4   : > { %s4345_s5 = scalar_lea.hbm %s5274_s13, 128  ;;  %s4349_s16 = scalar_lea.hbm %s5422_s19, 256 }
0x1ac5   : > { %p4346_p13 = scmp.ne.s32.totalorder %s5274_s13, %s4345_s5  ;;  %p4350_p2 = scmp.lt.u32.totalorder %s5274_s13, %s5422_s19 }
0x1ac6   : > { %p4351_p10 = scmp.lt.u32.totalorder %s4349_s16, %s4345_s5  ;;  %p4353_p5 = scmp.lt.u32.totalorder %s4345_s5, %s5274_s13 }
0x1ac7   : > { %p4347_p1 = pnand %p4346_p13, %p5423_p7 }
0x1ac8   : > { %p4352_p11 = por %p4351_p10, %p4350_p2 }
0x1ac9   : > { %p4348_p3 = pneg %p4347_p1 }
0x1aca   : > { %p4354_p0 = por %p4353_p5, %p4352_p11 }
0x1acc   : > { %p4355_p6 = pnand %p4354_p0, %p4348_p3 }
0x1ace   : > { %4358 = shalt.err (!%p4355_p6)
}
0x1acf   : > { %3897 = dma.vmem_to_hbm [thread:$0]  (%p5423_p7), %s5276_s20, 128, %s5274_s13, %s3302_s21  }
0x1ad0 PF: > { %s3327_s0 = sand.u32 1, %s4409_s3   ;;  %p5424_p12 = scmp.ne.s32.totalorder %s5394_s25, 0 }
0x1ad1   : > { %p5425_p8 = scmp.ge.s32.totalorder %s4421_s30, 2  ;;  %s3328_s11 = scalar_lea.sflag [#allocation4], %s3327_s0 }
0x1ad3   : > { %p3932_p9 = pnand %p5425_p8, %p5424_p12 }
0x1ad5   : > { %4404 = dma.done.wait (!%p3932_p9), %s3328_s11, 128  }
0x1ad6   : > { %4406 = vsyncadd (!%p3932_p9), %s3328_s11, 4294967168  ;;  %p42_p4 = scmp.ge.s32.totalorder %s4791_s6, 4   ;;  %s5426_s3 = smov %s4413_s28 }
0x1ad7   : > { %s5427_s28 = smov %s4417_s29  ;;  %s5428_s29 = smov %s4802_s2 }
0x1ad8   : > { %s5429_s30 = smov %s4791_s6  ;;  %44 = sbr.rel (!%p42_p4) target bundleno = 33 (0x21), region = 198 }
0x1adf   :  { %3333 = vsyncpa [#allocation3], 1 }
0x1ae0   :  { %3335 = vsyncpa [#allocation3 + $0x1], 1 }
0x1ae1   :  { %3336 = vsyncpa [#allocation6], 1 }
0x1ae2   :  { %3338 = vsyncpa [#allocation6 + $0x1], 1 }
0x1ae3   :  { %3339 = vsyncpa [#allocation9], 1 }
0x1ae4   :  { %3340 = vsyncpa [#allocation12], 1 }
0x1ae5   :  { %3341 = vsyncpa [#allocation15], 1 }
0x1ae6   :  { %3342 = vsyncpa [#allocation18], 1 }
0x1ae7   :  { %3343 = vsyncpa [#allocation4], 1 }
0x1ae8   :  { %3345 = vsyncpa [#allocation4 + $0x1], 1 }

</bundles_post_ra>
